<compile_context>
chip_gen: v7x
topology: tpu7x:2x2x1
jax: 0.10.0
libtpu: 0.0.40
codegen_flags: <defaults>
</compile_context>

<pallas_src>
import math
import functools

import jax
import jax.numpy as jnp
from jax.experimental import pallas as pl
from jax.experimental.pallas import tpu as pltpu


# MXU input dtype (v5e/v6e/v7x are bf16-native on the MXU).  Accumulation and
# all VPU work (softmax, LayerNorm, residuals, ReLU) stay in float32.
MATMUL_DTYPE = jnp.bfloat16


# ----------------------------------------------------------------------------
# Fused Pallas kernel: attention + post path on a (BB batches x WB windows) block
# ----------------------------------------------------------------------------

def _swin_layer_kernel(x_ref, bias_ref, wqkv_ref, bqkv_ref, wo_ref, bo_ref,
                       g1_ref, be1_ref, w1_ref, b1_ref, w2_ref, b2_ref,
                       g2_ref, be2_ref, o_ref, *, num_heads, head_dim, eps):
    BB, WB, L, D = x_ref.shape
    NWL = BB * WB                  # windows in this block
    R = NWL * L                    # tokens in this block
    cd = wqkv_ref.dtype            # bf16 MXU input dtype

    x2d = x_ref[...].reshape(R, D)            # f32, kept for the residual

    # --- fused QKV projection: one (R, D) @ (D, 3D) MXU matmul (K = D) ------
    # 1/sqrt(head_dim) is pre-folded into the q-columns of wqkv / bqkv.
    qkv = jnp.dot(x2d.astype(cd), wqkv_ref[...],
                  preferred_element_type=jnp.float32) + bqkv_ref[...]   # (R, 3D) f32

    # --- windowed multi-head attention --------------------------------------
    bias = bias_ref[...]                       # (WB, L, L), shared across batch & heads
    o_heads = []
    for h in range(num_heads):                 # per-head QK^T / PV (single batch dim)
        lo = h * head_dim
        q = qkv[:, lo:lo + head_dim].reshape(NWL, L, head_dim).astype(cd)
        k = qkv[:, D + lo:D + lo + head_dim].reshape(NWL, L, head_dim).astype(cd)
        v = qkv[:, 2 * D + lo:2 * D + lo + head_dim].reshape(NWL, L, head_dim).astype(cd)

        s = jnp.einsum("nqd,nkd->nqk", q, k,
                       preferred_element_type=jnp.float32)              # (NWL, L, L)
        # rel-pos bias + shift mask: implicit broadcast over the batch
        # sub-axis (no materialized broadcast_to/reshape copy).
        s = (s.reshape(BB, WB, L, L) + bias).reshape(NWL, L, L)
        s = s - jnp.max(s, axis=-1, keepdims=True)
        p = jnp.exp(s)
        p = p * pl.reciprocal(jnp.sum(p, axis=-1, keepdims=True), approx=True)

        o_heads.append(jnp.einsum("nqk,nkd->nqd", p.astype(cd), v,
                                  preferred_element_type=jnp.float32))  # (NWL, L, hd)

    # Heads are lane-contiguous in the d_model layout, so one concatenation
    # gives the (R, D) activation and the output projection is a single
    # MXU matmul with K = D (instead of num_heads K=head_dim matmuls).
    o_full = jnp.concatenate(o_heads, axis=-1).reshape(R, D)
    sa = jnp.dot(o_full.astype(cd), wo_ref[...],
                 preferred_element_type=jnp.float32) + bo_ref[...]      # (R, D) f32

    # --- residual + LN1 (f32) ------------------------------------------------
    z = x2d + sa
    mu = jnp.mean(z, axis=-1, keepdims=True)
    zc = z - mu
    var = jnp.mean(zc * zc, axis=-1, keepdims=True)
    x1 = zc * jax.lax.rsqrt(var + eps) * g1_ref[...] + be1_ref[...]

    # --- FFN (relu) -----------------------------------------------------------
    hid = jnp.dot(x1.astype(cd), w1_ref[...],
                  preferred_element_type=jnp.float32) + b1_ref[...]
    hid = jnp.maximum(hid, 0.0)
    ff = jnp.dot(hid.astype(cd), w2_ref[...],
                 preferred_element_type=jnp.float32) + b2_ref[...]

    # --- residual + LN2 (f32) -------------------------------------------------
    z2 = x1 + ff
    mu2 = jnp.mean(z2, axis=-1, keepdims=True)
    zc2 = z2 - mu2
    var2 = jnp.mean(zc2 * zc2, axis=-1, keepdims=True)
    out = zc2 * jax.lax.rsqrt(var2 + eps) * g2_ref[...] + be2_ref[...]

    o_ref[...] = out.reshape(BB, WB, L, D).astype(o_ref.dtype)


# ----------------------------------------------------------------------------
# Block-size helpers
# ----------------------------------------------------------------------------

def _largest_divisor_leq(n, cap):
    cap = max(1, min(n, cap))
    for t in range(cap, 0, -1):
        if n % t == 0:
            return t
    return 1


def _pick_blocks(B, NW, L, max_rows):
    """Pick (batches, windows) per block under a row cap; keep >= 2 grid steps
    when possible so both v7x TensorCores get work."""
    WB = _largest_divisor_leq(NW, max(1, max_rows // L))
    BB = _largest_divisor_leq(B, max(1, max_rows // (WB * L)))
    if (NW // WB) * (B // BB) < 2:
        if BB > 1:
            BB = _largest_divisor_leq(B, BB // 2)
        elif WB > 1:
            WB = _largest_divisor_leq(NW, WB // 2)
    return BB, WB


# ----------------------------------------------------------------------------
# Pallas wrapper
# ----------------------------------------------------------------------------

def swin_layer_windows(x_w, bias_w, params, *, num_heads, layer_norm_eps,
                       max_rows_per_block=512,
                       vmem_limit_bytes=48 * 1024 * 1024):
    """x_w: (B, num_windows, L, D) windowed + shifted tokens.
       bias_w: (num_windows, L, L) additive bias (rel-pos + shift mask).
       Returns the full encoder-layer output in the same windowed order."""
    B, NW, L, D = x_w.shape
    head_dim = D // num_heads
    BB, WB = _pick_blocks(B, NW, L, max_rows_per_block)

    kernel = functools.partial(_swin_layer_kernel, num_heads=num_heads,
                               head_dim=head_dim, eps=layer_norm_eps)

    # Constant operands: whole array resident in VMEM once (no per-step DMA,
    # no double buffering).
    const = pl.BlockSpec(memory_space=pltpu.MemorySpace.VMEM)

    # Grid: window-blocks (slow) x batch-blocks (fast); the bias block index
    # only depends on the window-block, so it stays resident across batches.
    return pl.pallas_call(
        kernel,
        out_shape=jax.ShapeDtypeStruct((B, NW, L, D), jnp.float32),
        grid=(NW // WB, B // BB),
        in_specs=[
            pl.BlockSpec((BB, WB, L, D), lambda w, b: (b, w, 0, 0)),   # x
            pl.BlockSpec((WB, L, L), lambda w, b: (w, 0, 0)),          # bias
            const, const, const, const,   # wqkv, bqkv, wo, bo
            const, const,                 # ln1 gamma / beta
            const, const, const, const,   # w1, b1, w2, b2
            const, const,                 # ln2 gamma / beta
        ],
        out_specs=pl.BlockSpec((BB, WB, L, D), lambda w, b: (b, w, 0, 0)),
        compiler_params=pltpu.CompilerParams(
            dimension_semantics=("parallel", "parallel"),
            vmem_limit_bytes=vmem_limit_bytes),
    )(x_w, bias_w,
      params["wqkv"], params["bqkv"], params["wo"], params["bo"],
      params["ln1_gamma"], params["ln1_beta"],
      params["w1"], params["b1"], params["w2"], params["b2"],
      params["ln2_gamma"], params["ln2_beta"])


# ----------------------------------------------------------------------------
# Relative positional bias + shifted-window mask (precomputed once, per window)
# ----------------------------------------------------------------------------

def build_attn_bias(pos_emb, *, height, width, window_size, shift_size):
    """Additive per-window bias = expanded relative positional embedding
    (share_heads=True) + shifted-window padding mask (-1e30 where forbidden).
    Shape: (num_windows, L, L); shared across batch and heads."""
    wh, ww = window_size
    sh, sw = shift_size
    nHb, nWb = height // wh, width // ww
    L = wh * ww

    # expand_embedding: bias[q, k] = table[kh - qh + wh - 1, kw - qw + ww - 1]
    rel_h = jnp.arange(wh)[None, :] - jnp.arange(wh)[:, None] + (wh - 1)
    rel_w = jnp.arange(ww)[None, :] - jnp.arange(ww)[:, None] + (ww - 1)
    table = pos_emb[..., 0]                                      # (2wh-1, 2ww-1)
    bias = table[rel_h[:, None, :, None], rel_w[None, :, None, :]]
    bias = bias.reshape(L, L)

    # Shift mask: in the last row/column of windows, cyclically wrapped tokens
    # must not attend across the wrap boundary.
    gh = (jnp.arange(nHb)[:, None] == nHb - 1) & (jnp.arange(wh)[None, :] >= wh - sh)
    gw = (jnp.arange(nWb)[:, None] == nWb - 1) & (jnp.arange(ww)[None, :] >= ww - sw)
    mh = gh[:, :, None] != gh[:, None, :]                        # (nHb, whq, whk)
    mw = gw[:, :, None] != gw[:, None, :]                        # (nWb, wwq, wwk)
    mask = mh[:, None, :, None, :, None] | mw[None, :, None, :, None, :]
    mask = mask.reshape(nHb * nWb, L, L)
    add_mask = jnp.where(mask, jnp.float32(-1e30), jnp.float32(0.0))

    return bias[None, :, :].astype(jnp.float32) + add_mask       # (NW, L, L)


# ----------------------------------------------------------------------------
# Full encoder layer forward (norm_first=False, relu activation, eval mode)
# ----------------------------------------------------------------------------

def make_swin_layer_forward(*, height, width, window_size, shift_size,
                            num_heads, layer_norm_eps=1e-5):
    wh, ww = window_size
    sh, sw = shift_size
    nHb, nWb = height // wh, width // ww
    NW = nHb * nWb
    L = wh * ww

    def forward(src, params):
        S, B, D = src.shape

        # window partition + cyclic shift (pure layout; fused by XLA under jit)
        xs = jnp.roll(src.reshape(height, width, B, D), shift=(-sh, -sw), axis=(0, 1))
        x_w = (xs.reshape(nHb, wh, nWb, ww, B, D)
                 .transpose(4, 0, 2, 1, 3, 5)
                 .reshape(B, NW, L, D))

        # One fused Pallas kernel: attention + add/LN1 + FFN + add/LN2, all in
        # windowed token order (LN/FFN are per-token, so the permutation
        # commutes); the un-window / un-shift happens once at the very end.
        out_w = swin_layer_windows(x_w, params["attn_bias_win"], params,
                                   num_heads=num_heads,
                                   layer_norm_eps=layer_norm_eps)

        # un-window + reverse cyclic shift, back to (S, B, D)
        ys = (out_w.reshape(B, nHb, nWb, wh, ww, D)
                   .transpose(1, 3, 2, 4, 0, 5)
                   .reshape(height, width, B, D))
        ys = jnp.roll(ys, shift=(sh, sw), axis=(0, 1))
        return ys.reshape(S, B, D)

    return forward


# ----------------------------------------------------------------------------
# Pure-JAX reference (f32, torch-layout weights) for correctness check
# ----------------------------------------------------------------------------

def reference_forward(src, raw, bias_win, *, height, width, window_size,
                      shift_size, num_heads, eps=1e-5):
    S, B, D = src.shape
    wh, ww = window_size
    sh, sw = shift_size
    nHb, nWb = height // wh, width // ww
    NW = nHb * nWb
    L = wh * ww
    hd = D // num_heads

    def ln(z, g, b):
        m = jnp.mean(z, -1, keepdims=True)
        v = jnp.mean((z - m) ** 2, -1, keepdims=True)
        return (z - m) / jnp.sqrt(v + eps) * g + b

    xs = jnp.roll(src.reshape(height, width, B, D), (-sh, -sw), axis=(0, 1))
    xw = (xs.reshape(nHb, wh, nWb, ww, B, D)
            .transpose(4, 0, 2, 1, 3, 5).reshape(B * NW, L, D))
    qkv = xw @ raw["in_proj_w"].T + raw["in_proj_b"]
    q, k, v = jnp.split(qkv, 3, axis=-1)
    q = q.reshape(B * NW, L, num_heads, hd).transpose(0, 2, 1, 3)
    k = k.reshape(B * NW, L, num_heads, hd).transpose(0, 2, 1, 3)
    v = v.reshape(B * NW, L, num_heads, hd).transpose(0, 2, 1, 3)
    s = jnp.einsum("nhqd,nhkd->nhqk", q, k) / math.sqrt(hd)
    s = s.reshape(B, NW, num_heads, L, L) + bias_win[None, :, None]
    s = s.reshape(B * NW, num_heads, L, L)
    p = jax.nn.softmax(s, axis=-1)
    o = jnp.einsum("nhqk,nhkd->nhqd", p, v).transpose(0, 2, 1, 3).reshape(B * NW, L, D)
    o = o @ raw["out_proj_w"].T + raw["out_proj_b"]
    ys = (o.reshape(B, nHb, nWb, wh, ww, D)
            .transpose(1, 3, 2, 4, 0, 5).reshape(height, width, B, D))
    sa = jnp.roll(ys, (sh, sw), axis=(0, 1)).reshape(S, B, D)
    x1 = ln(src + sa, raw["ln1_g"], raw["ln1_b"])
    h = jnp.maximum(x1 @ raw["w1"].T + raw["b1"], 0.0)
    ff = h @ raw["w2"].T + raw["b2"]
    return ln(x1 + ff, raw["ln2_g"], raw["ln2_b"])


# ----------------------------------------------------------------------------
# Main
# ----------------------------------------------------------------------------

if __name__ == "__main__":
    d_model = 32
    nhead = 4
    dim_feedforward = 64
    height, width = 8, 8
    window_size = (4, 4)
    shift_size = (2, 2)
    batch = 2
    seq = height * width
    wh, ww = window_size
    head_dim = d_model // nhead
    scale = 1.0 / math.sqrt(head_dim)

    key = jax.random.PRNGKey(0)
    ks = jax.random.split(key, 10)
    sc = 0.05

    # torch-layout parameters (f32 reference copies)
    in_proj_w = sc * jax.random.normal(ks[0], (3 * d_model, d_model), jnp.float32)
    in_proj_b = sc * jax.random.normal(ks[1], (3 * d_model,), jnp.float32)
    out_proj_w = sc * jax.random.normal(ks[2], (d_model, d_model), jnp.float32)
    out_proj_b = sc * jax.random.normal(ks[3], (d_model,), jnp.float32)
    w1 = sc * jax.random.normal(ks[4], (dim_feedforward, d_model), jnp.float32)
    b1 = sc * jax.random.normal(ks[5], (dim_feedforward,), jnp.float32)
    w2 = sc * jax.random.normal(ks[6], (d_model, dim_feedforward), jnp.float32)
    b2 = sc * jax.random.normal(ks[7], (d_model,), jnp.float32)
    pos_emb = sc * jax.random.normal(ks[8], (2 * wh - 1, 2 * ww - 1, 1), jnp.float32)
    src = jax.random.normal(ks[9], (seq, batch, d_model), jnp.float32)

    ln1_g = jnp.ones((d_model,), jnp.float32)
    ln1_b = jnp.zeros((d_model,), jnp.float32)
    ln2_g = jnp.ones((d_model,), jnp.float32)
    ln2_b = jnp.zeros((d_model,), jnp.float32)

    bias_win = build_attn_bias(pos_emb, height=height, width=width,
                               window_size=window_size, shift_size=shift_size)

    # kernel parameters: pre-transposed (K, N) weights, bf16 MXU inputs,
    # 1/sqrt(head_dim) folded into the q-part of the QKV projection,
    # biases / LN params / bias table stay f32
    wqkv_t = in_proj_w.T.at[:, :d_model].multiply(scale)                 # (D, 3D)
    bqkv_s = in_proj_b.at[:d_model].multiply(scale)                      # (3D,)
    params = {
        "wqkv": wqkv_t.astype(MATMUL_DTYPE),                             # (D, 3D)
        "bqkv": bqkv_s.reshape(1, 3 * d_model),
        "wo": out_proj_w.T.astype(MATMUL_DTYPE),                         # (D, D)
        "bo": out_proj_b.reshape(1, d_model),
        "w1": w1.T.astype(MATMUL_DTYPE),                                 # (D, FF)
        "b1": b1.reshape(1, dim_feedforward),
        "w2": w2.T.astype(MATMUL_DTYPE),                                 # (FF, D)
        "b2": b2.reshape(1, d_model),
        "ln1_gamma": ln1_g.reshape(1, d_model), "ln1_beta": ln1_b.reshape(1, d_model),
        "ln2_gamma": ln2_g.reshape(1, d_model), "ln2_beta": ln2_b.reshape(1, d_model),
        "attn_bias_win": bias_win,                                       # (NW, L, L)
    }

    forward = make_swin_layer_forward(height=height, width=width,
                                      window_size=window_size,
                                      shift_size=shift_size,
                                      num_heads=nhead)
    out = jax.jit(forward)(src, params)
    out = jax.block_until_ready(out)

    raw = {"in_proj_w": in_proj_w, "in_proj_b": in_proj_b,
           "out_proj_w": out_proj_w, "out_proj_b": out_proj_b,
           "w1": w1, "b1": b1, "w2": w2, "b2": b2,
           "ln1_g": ln1_g, "ln1_b": ln1_b, "ln2_g": ln2_g, "ln2_b": ln2_b}
    ref = reference_forward(src, raw, bias_win, height=height, width=width,
                            window_size=window_size, shift_size=shift_size,
                            num_heads=nhead)

    assert out.shape == src.shape
    max_err = float(jnp.max(jnp.abs(out - ref)))
    # bf16 MXU inputs + approx reciprocal vs f32 reference -> mixed-precision tolerance
    assert max_err < 2.5e-2, f"mismatch vs reference: {max_err}"

    print("KERNEL_OK")
</pallas_src>

<mosaic_0001>
module attributes {stable_mosaic.version = 11 : i64} {
  func.func @_swin_layer_kernel(%arg0: i32, %arg1: i32, %arg2: memref<1x4x16x32xf32, #tpu.memory_space<vmem>>, %arg3: memref<4x16x16xf32, #tpu.memory_space<vmem>>, %arg4: memref<32x96xbf16, #tpu.memory_space<vmem>>, %arg5: memref<1x96xf32, #tpu.memory_space<vmem>>, %arg6: memref<32x32xbf16, #tpu.memory_space<vmem>>, %arg7: memref<1x32xf32, #tpu.memory_space<vmem>>, %arg8: memref<1x32xf32, #tpu.memory_space<vmem>>, %arg9: memref<1x32xf32, #tpu.memory_space<vmem>>, %arg10: memref<32x64xbf16, #tpu.memory_space<vmem>>, %arg11: memref<1x64xf32, #tpu.memory_space<vmem>>, %arg12: memref<64x32xbf16, #tpu.memory_space<vmem>>, %arg13: memref<1x32xf32, #tpu.memory_space<vmem>>, %arg14: memref<1x32xf32, #tpu.memory_space<vmem>>, %arg15: memref<1x32xf32, #tpu.memory_space<vmem>>, %arg16: memref<1x4x16x32xf32, #tpu.memory_space<vmem>>) attributes {dimension_semantics = [#tpu.dimension_semantics<parallel>, #tpu.dimension_semantics<parallel>], iteration_bounds = array<i64: 1, 2>, scalar_prefetch = 0 : i64, scratch_operands = 0 : i64, tpu.core_type = #tpu.core_type<tc>, window_params = [{transform_indices = @transform_0, window_bounds = array<i64: 1, 4, 16, 32>}, {transform_indices = @transform_1, window_bounds = array<i64: 4, 16, 16>}, {pipeline_mode = #tpu.pipeline_mode<synchronous>, transform_indices = @transform_2, window_bounds = array<i64: 32, 96>}, {pipeline_mode = #tpu.pipeline_mode<synchronous>, transform_indices = @transform_3, window_bounds = array<i64: 1, 96>}, {pipeline_mode = #tpu.pipeline_mode<synchronous>, transform_indices = @transform_4, window_bounds = array<i64: 32, 32>}, {pipeline_mode = #tpu.pipeline_mode<synchronous>, transform_indices = @transform_5, window_bounds = array<i64: 1, 32>}, {pipeline_mode = #tpu.pipeline_mode<synchronous>, transform_indices = @transform_6, window_bounds = array<i64: 1, 32>}, {pipeline_mode = #tpu.pipeline_mode<synchronous>, transform_indices = @transform_7, window_bounds = array<i64: 1, 32>}, {pipeline_mode = #tpu.pipeline_mode<synchronous>, transform_indices = @transform_8, window_bounds = array<i64: 32, 64>}, {pipeline_mode = #tpu.pipeline_mode<synchronous>, transform_indices = @transform_9, window_bounds = array<i64: 1, 64>}, {pipeline_mode = #tpu.pipeline_mode<synchronous>, transform_indices = @transform_10, window_bounds = array<i64: 64, 32>}, {pipeline_mode = #tpu.pipeline_mode<synchronous>, transform_indices = @transform_11, window_bounds = array<i64: 1, 32>}, {pipeline_mode = #tpu.pipeline_mode<synchronous>, transform_indices = @transform_12, window_bounds = array<i64: 1, 32>}, {pipeline_mode = #tpu.pipeline_mode<synchronous>, transform_indices = @transform_13, window_bounds = array<i64: 1, 32>}, {transform_indices = @transform_14, window_bounds = array<i64: 1, 4, 16, 32>}]} {
    %c0 = arith.constant 0 : index
    %c0_0 = arith.constant 0 : index
    %c0_1 = arith.constant 0 : index
    %c0_2 = arith.constant 0 : index
    %0 = vector.load %arg2[%c0, %c0_0, %c0_1, %c0_2] : memref<1x4x16x32xf32, #tpu.memory_space<vmem>>, vector<1x4x16x32xf32>
    %1 = vector.shape_cast %0 : vector<1x4x16x32xf32> to vector<64x32xf32>
    %2 = arith.truncf %1 : vector<64x32xf32> to vector<64x32xbf16>
    %c0_3 = arith.constant 0 : index
    %c0_4 = arith.constant 0 : index
    %3 = vector.load %arg4[%c0_3, %c0_4] : memref<32x96xbf16, #tpu.memory_space<vmem>>, vector<32x96xbf16>
    %cst = arith.constant dense<0.000000e+00> : vector<64x96xf32>
    %4 = tpu.matmul %2, %3, %cst {dimension_numbers = #tpu.dot_dimension_numbers<[1], [0], [0], [1], [0, 0, 1, 1], [], []>} : vector<64x32xbf16>, vector<32x96xbf16>, vector<64x96xf32> -> vector<64x96xf32>
    %c0_5 = arith.constant 0 : index
    %c0_6 = arith.constant 0 : index
    %5 = vector.load %arg5[%c0_5, %c0_6] : memref<1x96xf32, #tpu.memory_space<vmem>>, vector<1x96xf32>
    %6 = vector.broadcast %5 : vector<1x96xf32> to vector<64x96xf32>
    %7 = arith.addf %4, %6 : vector<64x96xf32>
    %c0_7 = arith.constant 0 : index
    %c0_8 = arith.constant 0 : index
    %c0_9 = arith.constant 0 : index
    %8 = vector.load %arg3[%c0_7, %c0_8, %c0_9] : memref<4x16x16xf32, #tpu.memory_space<vmem>>, vector<4x16x16xf32>
    %9 = vector.extract_strided_slice %7 {offsets = [0, 0], sizes = [64, 8], strides = [1, 1]} : vector<64x96xf32> to vector<64x8xf32>
    %10 = vector.shape_cast %9 : vector<64x8xf32> to vector<4x16x8xf32>
    %11 = arith.truncf %10 : vector<4x16x8xf32> to vector<4x16x8xbf16>
    %12 = vector.extract_strided_slice %7 {offsets = [0, 32], sizes = [64, 8], strides = [1, 1]} : vector<64x96xf32> to vector<64x8xf32>
    %13 = vector.shape_cast %12 : vector<64x8xf32> to vector<4x16x8xf32>
    %14 = arith.truncf %13 : vector<4x16x8xf32> to vector<4x16x8xbf16>
    %15 = vector.extract_strided_slice %7 {offsets = [0, 64], sizes = [64, 8], strides = [1, 1]} : vector<64x96xf32> to vector<64x8xf32>
    %16 = vector.shape_cast %15 : vector<64x8xf32> to vector<4x16x8xf32>
    %17 = arith.truncf %16 : vector<4x16x8xf32> to vector<4x16x8xbf16>
    "tpu.trace_start"() <{level = 10 : i32, message = "nqd,nkd->nqk"}> : () -> ()
    %cst_10 = arith.constant dense<0.000000e+00> : vector<4x16x16xf32>
    %18 = tpu.matmul %11, %14, %cst_10 {dimension_numbers = #tpu.dot_dimension_numbers<[2], [2], [1], [1], [0, 0, 0, 1, 1, 1], [0], [0]>} : vector<4x16x8xbf16>, vector<4x16x8xbf16>, vector<4x16x16xf32> -> vector<4x16x16xf32>
    "tpu.trace_stop"() : () -> ()
    %19 = vector.shape_cast %18 : vector<4x16x16xf32> to vector<1x4x16x16xf32>
    %20 = vector.shape_cast %8 : vector<4x16x16xf32> to vector<1x4x16x16xf32>
    %21 = arith.addf %19, %20 : vector<1x4x16x16xf32>
    %22 = vector.shape_cast %21 : vector<1x4x16x16xf32> to vector<4x16x16xf32>
    %cst_11 = arith.constant dense<0xFF800000> : vector<4x16xf32>
    %23 = vector.multi_reduction <maximumf>, %22, %cst_11 [2] : vector<4x16x16xf32> to vector<4x16xf32>
    %24 = vector.shape_cast %23 : vector<4x16xf32> to vector<4x16x1xf32>
    %25 = vector.broadcast %24 : vector<4x16x1xf32> to vector<4x16x16xf32>
    %26 = arith.subf %22, %25 : vector<4x16x16xf32>
    %27 = math.exp %26 : vector<4x16x16xf32>
    %cst_12 = arith.constant dense<0.000000e+00> : vector<4x16xf32>
    %28 = vector.multi_reduction <add>, %27, %cst_12 [2] : vector<4x16x16xf32> to vector<4x16xf32>
    %29 = vector.shape_cast %28 : vector<4x16xf32> to vector<4x16x1xf32>
    %30 = tpu.reciprocal %29 {approx = true} : vector<4x16x1xf32> -> vector<4x16x1xf32>
    %31 = vector.broadcast %30 : vector<4x16x1xf32> to vector<4x16x16xf32>
    %32 = arith.mulf %27, %31 : vector<4x16x16xf32>
    %33 = arith.truncf %32 : vector<4x16x16xf32> to vector<4x16x16xbf16>
    "tpu.trace_start"() <{level = 10 : i32, message = "nqk,nkd->nqd"}> : () -> ()
    %cst_13 = arith.constant dense<0.000000e+00> : vector<4x16x8xf32>
    %34 = tpu.matmul %33, %17, %cst_13 {dimension_numbers = #tpu.dot_dimension_numbers<[2], [1], [1], [2], [0, 0, 0, 1, 1, 2], [0], [0]>} : vector<4x16x16xbf16>, vector<4x16x8xbf16>, vector<4x16x8xf32> -> vector<4x16x8xf32>
    "tpu.trace_stop"() : () -> ()
    %35 = vector.extract_strided_slice %7 {offsets = [0, 8], sizes = [64, 8], strides = [1, 1]} : vector<64x96xf32> to vector<64x8xf32>
    %36 = vector.shape_cast %35 : vector<64x8xf32> to vector<4x16x8xf32>
    %37 = arith.truncf %36 : vector<4x16x8xf32> to vector<4x16x8xbf16>
    %38 = vector.extract_strided_slice %7 {offsets = [0, 40], sizes = [64, 8], strides = [1, 1]} : vector<64x96xf32> to vector<64x8xf32>
    %39 = vector.shape_cast %38 : vector<64x8xf32> to vector<4x16x8xf32>
    %40 = arith.truncf %39 : vector<4x16x8xf32> to vector<4x16x8xbf16>
    %41 = vector.extract_strided_slice %7 {offsets = [0, 72], sizes = [64, 8], strides = [1, 1]} : vector<64x96xf32> to vector<64x8xf32>
    %42 = vector.shape_cast %41 : vector<64x8xf32> to vector<4x16x8xf32>
    %43 = arith.truncf %42 : vector<4x16x8xf32> to vector<4x16x8xbf16>
    "tpu.trace_start"() <{level = 10 : i32, message = "nqd,nkd->nqk"}> : () -> ()
    %cst_14 = arith.constant dense<0.000000e+00> : vector<4x16x16xf32>
    %44 = tpu.matmul %37, %40, %cst_14 {dimension_numbers = #tpu.dot_dimension_numbers<[2], [2], [1], [1], [0, 0, 0, 1, 1, 1], [0], [0]>} : vector<4x16x8xbf16>, vector<4x16x8xbf16>, vector<4x16x16xf32> -> vector<4x16x16xf32>
    "tpu.trace_stop"() : () -> ()
    %45 = vector.shape_cast %44 : vector<4x16x16xf32> to vector<1x4x16x16xf32>
    %46 = vector.shape_cast %8 : vector<4x16x16xf32> to vector<1x4x16x16xf32>
    %47 = arith.addf %45, %46 : vector<1x4x16x16xf32>
    %48 = vector.shape_cast %47 : vector<1x4x16x16xf32> to vector<4x16x16xf32>
    %cst_15 = arith.constant dense<0xFF800000> : vector<4x16xf32>
    %49 = vector.multi_reduction <maximumf>, %48, %cst_15 [2] : vector<4x16x16xf32> to vector<4x16xf32>
    %50 = vector.shape_cast %49 : vector<4x16xf32> to vector<4x16x1xf32>
    %51 = vector.broadcast %50 : vector<4x16x1xf32> to vector<4x16x16xf32>
    %52 = arith.subf %48, %51 : vector<4x16x16xf32>
    %53 = math.exp %52 : vector<4x16x16xf32>
    %cst_16 = arith.constant dense<0.000000e+00> : vector<4x16xf32>
    %54 = vector.multi_reduction <add>, %53, %cst_16 [2] : vector<4x16x16xf32> to vector<4x16xf32>
    %55 = vector.shape_cast %54 : vector<4x16xf32> to vector<4x16x1xf32>
    %56 = tpu.reciprocal %55 {approx = true} : vector<4x16x1xf32> -> vector<4x16x1xf32>
    %57 = vector.broadcast %56 : vector<4x16x1xf32> to vector<4x16x16xf32>
    %58 = arith.mulf %53, %57 : vector<4x16x16xf32>
    %59 = arith.truncf %58 : vector<4x16x16xf32> to vector<4x16x16xbf16>
    "tpu.trace_start"() <{level = 10 : i32, message = "nqk,nkd->nqd"}> : () -> ()
    %cst_17 = arith.constant dense<0.000000e+00> : vector<4x16x8xf32>
    %60 = tpu.matmul %59, %43, %cst_17 {dimension_numbers = #tpu.dot_dimension_numbers<[2], [1], [1], [2], [0, 0, 0, 1, 1, 2], [0], [0]>} : vector<4x16x16xbf16>, vector<4x16x8xbf16>, vector<4x16x8xf32> -> vector<4x16x8xf32>
    "tpu.trace_stop"() : () -> ()
    %61 = vector.extract_strided_slice %7 {offsets = [0, 16], sizes = [64, 8], strides = [1, 1]} : vector<64x96xf32> to vector<64x8xf32>
    %62 = vector.shape_cast %61 : vector<64x8xf32> to vector<4x16x8xf32>
    %63 = arith.truncf %62 : vector<4x16x8xf32> to vector<4x16x8xbf16>
    %64 = vector.extract_strided_slice %7 {offsets = [0, 48], sizes = [64, 8], strides = [1, 1]} : vector<64x96xf32> to vector<64x8xf32>
    %65 = vector.shape_cast %64 : vector<64x8xf32> to vector<4x16x8xf32>
    %66 = arith.truncf %65 : vector<4x16x8xf32> to vector<4x16x8xbf16>
    %67 = vector.extract_strided_slice %7 {offsets = [0, 80], sizes = [64, 8], strides = [1, 1]} : vector<64x96xf32> to vector<64x8xf32>
    %68 = vector.shape_cast %67 : vector<64x8xf32> to vector<4x16x8xf32>
    %69 = arith.truncf %68 : vector<4x16x8xf32> to vector<4x16x8xbf16>
    "tpu.trace_start"() <{level = 10 : i32, message = "nqd,nkd->nqk"}> : () -> ()
    %cst_18 = arith.constant dense<0.000000e+00> : vector<4x16x16xf32>
    %70 = tpu.matmul %63, %66, %cst_18 {dimension_numbers = #tpu.dot_dimension_numbers<[2], [2], [1], [1], [0, 0, 0, 1, 1, 1], [0], [0]>} : vector<4x16x8xbf16>, vector<4x16x8xbf16>, vector<4x16x16xf32> -> vector<4x16x16xf32>
    "tpu.trace_stop"() : () -> ()
    %71 = vector.shape_cast %70 : vector<4x16x16xf32> to vector<1x4x16x16xf32>
    %72 = vector.shape_cast %8 : vector<4x16x16xf32> to vector<1x4x16x16xf32>
    %73 = arith.addf %71, %72 : vector<1x4x16x16xf32>
    %74 = vector.shape_cast %73 : vector<1x4x16x16xf32> to vector<4x16x16xf32>
    %cst_19 = arith.constant dense<0xFF800000> : vector<4x16xf32>
    %75 = vector.multi_reduction <maximumf>, %74, %cst_19 [2] : vector<4x16x16xf32> to vector<4x16xf32>
    %76 = vector.shape_cast %75 : vector<4x16xf32> to vector<4x16x1xf32>
    %77 = vector.broadcast %76 : vector<4x16x1xf32> to vector<4x16x16xf32>
    %78 = arith.subf %74, %77 : vector<4x16x16xf32>
    %79 = math.exp %78 : vector<4x16x16xf32>
    %cst_20 = arith.constant dense<0.000000e+00> : vector<4x16xf32>
    %80 = vector.multi_reduction <add>, %79, %cst_20 [2] : vector<4x16x16xf32> to vector<4x16xf32>
    %81 = vector.shape_cast %80 : vector<4x16xf32> to vector<4x16x1xf32>
    %82 = tpu.reciprocal %81 {approx = true} : vector<4x16x1xf32> -> vector<4x16x1xf32>
    %83 = vector.broadcast %82 : vector<4x16x1xf32> to vector<4x16x16xf32>
    %84 = arith.mulf %79, %83 : vector<4x16x16xf32>
    %85 = arith.truncf %84 : vector<4x16x16xf32> to vector<4x16x16xbf16>
    "tpu.trace_start"() <{level = 10 : i32, message = "nqk,nkd->nqd"}> : () -> ()
    %cst_21 = arith.constant dense<0.000000e+00> : vector<4x16x8xf32>
    %86 = tpu.matmul %85, %69, %cst_21 {dimension_numbers = #tpu.dot_dimension_numbers<[2], [1], [1], [2], [0, 0, 0, 1, 1, 2], [0], [0]>} : vector<4x16x16xbf16>, vector<4x16x8xbf16>, vector<4x16x8xf32> -> vector<4x16x8xf32>
    "tpu.trace_stop"() : () -> ()
    %87 = vector.extract_strided_slice %7 {offsets = [0, 24], sizes = [64, 8], strides = [1, 1]} : vector<64x96xf32> to vector<64x8xf32>
    %88 = vector.shape_cast %87 : vector<64x8xf32> to vector<4x16x8xf32>
    %89 = arith.truncf %88 : vector<4x16x8xf32> to vector<4x16x8xbf16>
    %90 = vector.extract_strided_slice %7 {offsets = [0, 56], sizes = [64, 8], strides = [1, 1]} : vector<64x96xf32> to vector<64x8xf32>
    %91 = vector.shape_cast %90 : vector<64x8xf32> to vector<4x16x8xf32>
    %92 = arith.truncf %91 : vector<4x16x8xf32> to vector<4x16x8xbf16>
    %93 = vector.extract_strided_slice %7 {offsets = [0, 88], sizes = [64, 8], strides = [1, 1]} : vector<64x96xf32> to vector<64x8xf32>
    %94 = vector.shape_cast %93 : vector<64x8xf32> to vector<4x16x8xf32>
    %95 = arith.truncf %94 : vector<4x16x8xf32> to vector<4x16x8xbf16>
    "tpu.trace_start"() <{level = 10 : i32, message = "nqd,nkd->nqk"}> : () -> ()
    %cst_22 = arith.constant dense<0.000000e+00> : vector<4x16x16xf32>
    %96 = tpu.matmul %89, %92, %cst_22 {dimension_numbers = #tpu.dot_dimension_numbers<[2], [2], [1], [1], [0, 0, 0, 1, 1, 1], [0], [0]>} : vector<4x16x8xbf16>, vector<4x16x8xbf16>, vector<4x16x16xf32> -> vector<4x16x16xf32>
    "tpu.trace_stop"() : () -> ()
    %97 = vector.shape_cast %96 : vector<4x16x16xf32> to vector<1x4x16x16xf32>
    %98 = vector.shape_cast %8 : vector<4x16x16xf32> to vector<1x4x16x16xf32>
    %99 = arith.addf %97, %98 : vector<1x4x16x16xf32>
    %100 = vector.shape_cast %99 : vector<1x4x16x16xf32> to vector<4x16x16xf32>
    %cst_23 = arith.constant dense<0xFF800000> : vector<4x16xf32>
    %101 = vector.multi_reduction <maximumf>, %100, %cst_23 [2] : vector<4x16x16xf32> to vector<4x16xf32>
    %102 = vector.shape_cast %101 : vector<4x16xf32> to vector<4x16x1xf32>
    %103 = vector.broadcast %102 : vector<4x16x1xf32> to vector<4x16x16xf32>
    %104 = arith.subf %100, %103 : vector<4x16x16xf32>
    %105 = math.exp %104 : vector<4x16x16xf32>
    %cst_24 = arith.constant dense<0.000000e+00> : vector<4x16xf32>
    %106 = vector.multi_reduction <add>, %105, %cst_24 [2] : vector<4x16x16xf32> to vector<4x16xf32>
    %107 = vector.shape_cast %106 : vector<4x16xf32> to vector<4x16x1xf32>
    %108 = tpu.reciprocal %107 {approx = true} : vector<4x16x1xf32> -> vector<4x16x1xf32>
    %109 = vector.broadcast %108 : vector<4x16x1xf32> to vector<4x16x16xf32>
    %110 = arith.mulf %105, %109 : vector<4x16x16xf32>
    %111 = arith.truncf %110 : vector<4x16x16xf32> to vector<4x16x16xbf16>
    "tpu.trace_start"() <{level = 10 : i32, message = "nqk,nkd->nqd"}> : () -> ()
    %cst_25 = arith.constant dense<0.000000e+00> : vector<4x16x8xf32>
    %112 = tpu.matmul %111, %95, %cst_25 {dimension_numbers = #tpu.dot_dimension_numbers<[2], [1], [1], [2], [0, 0, 0, 1, 1, 2], [0], [0]>} : vector<4x16x16xbf16>, vector<4x16x8xbf16>, vector<4x16x8xf32> -> vector<4x16x8xf32>
    "tpu.trace_stop"() : () -> ()
    %113 = tpu.concatenate %34, %60, %86, %112 in 2 : vector<4x16x8xf32>, vector<4x16x8xf32>, vector<4x16x8xf32>, vector<4x16x8xf32> -> vector<4x16x32xf32>
    %114 = vector.shape_cast %113 : vector<4x16x32xf32> to vector<64x32xf32>
    %115 = arith.truncf %114 : vector<64x32xf32> to vector<64x32xbf16>
    %c0_26 = arith.constant 0 : index
    %c0_27 = arith.constant 0 : index
    %116 = vector.load %arg6[%c0_26, %c0_27] : memref<32x32xbf16, #tpu.memory_space<vmem>>, vector<32x32xbf16>
    %cst_28 = arith.constant dense<0.000000e+00> : vector<64x32xf32>
    %117 = tpu.matmul %115, %116, %cst_28 {dimension_numbers = #tpu.dot_dimension_numbers<[1], [0], [0], [1], [0, 0, 1, 1], [], []>} : vector<64x32xbf16>, vector<32x32xbf16>, vector<64x32xf32> -> vector<64x32xf32>
    %c0_29 = arith.constant 0 : index
    %c0_30 = arith.constant 0 : index
    %118 = vector.load %arg7[%c0_29, %c0_30] : memref<1x32xf32, #tpu.memory_space<vmem>>, vector<1x32xf32>
    %119 = vector.broadcast %118 : vector<1x32xf32> to vector<64x32xf32>
    %120 = arith.addf %117, %119 : vector<64x32xf32>
    %121 = arith.addf %1, %120 : vector<64x32xf32>
    %cst_31 = arith.constant dense<0.000000e+00> : vector<64xf32>
    %122 = vector.multi_reduction <add>, %121, %cst_31 [1] : vector<64x32xf32> to vector<64xf32>
    %123 = vector.shape_cast %122 : vector<64xf32> to vector<64x1xf32>
    %cst_32 = arith.constant 3.200000e+01 : f32
    %124 = vector.broadcast %cst_32 : f32 to vector<64x1xf32>
    %125 = arith.divf %123, %124 : vector<64x1xf32>
    %126 = vector.broadcast %125 : vector<64x1xf32> to vector<64x32xf32>
    %127 = arith.subf %121, %126 : vector<64x32xf32>
    %128 = arith.mulf %127, %127 : vector<64x32xf32>
    %cst_33 = arith.constant dense<0.000000e+00> : vector<64xf32>
    %129 = vector.multi_reduction <add>, %128, %cst_33 [1] : vector<64x32xf32> to vector<64xf32>
    %130 = vector.shape_cast %129 : vector<64xf32> to vector<64x1xf32>
    %cst_34 = arith.constant 3.200000e+01 : f32
    %131 = vector.broadcast %cst_34 : f32 to vector<64x1xf32>
    %132 = arith.divf %130, %131 : vector<64x1xf32>
    %cst_35 = arith.constant 9.99999974E-6 : f32
    %133 = vector.broadcast %cst_35 : f32 to vector<64x1xf32>
    %134 = arith.addf %132, %133 : vector<64x1xf32>
    %135 = math.rsqrt %134 : vector<64x1xf32>
    %136 = vector.broadcast %135 : vector<64x1xf32> to vector<64x32xf32>
    %137 = arith.mulf %127, %136 : vector<64x32xf32>
    %c0_36 = arith.constant 0 : index
    %c0_37 = arith.constant 0 : index
    %138 = vector.load %arg8[%c0_36, %c0_37] : memref<1x32xf32, #tpu.memory_space<vmem>>, vector<1x32xf32>
    %139 = vector.broadcast %138 : vector<1x32xf32> to vector<64x32xf32>
    %140 = arith.mulf %137, %139 : vector<64x32xf32>
    %c0_38 = arith.constant 0 : index
    %c0_39 = arith.constant 0 : index
    %141 = vector.load %arg9[%c0_38, %c0_39] : memref<1x32xf32, #tpu.memory_space<vmem>>, vector<1x32xf32>
    %142 = vector.broadcast %141 : vector<1x32xf32> to vector<64x32xf32>
    %143 = arith.addf %140, %142 : vector<64x32xf32>
    %144 = arith.truncf %143 : vector<64x32xf32> to vector<64x32xbf16>
    %c0_40 = arith.constant 0 : index
    %c0_41 = arith.constant 0 : index
    %145 = vector.load %arg10[%c0_40, %c0_41] : memref<32x64xbf16, #tpu.memory_space<vmem>>, vector<32x64xbf16>
    %cst_42 = arith.constant dense<0.000000e+00> : vector<64x64xf32>
    %146 = tpu.matmul %144, %145, %cst_42 {dimension_numbers = #tpu.dot_dimension_numbers<[1], [0], [0], [1], [0, 0, 1, 1], [], []>} : vector<64x32xbf16>, vector<32x64xbf16>, vector<64x64xf32> -> vector<64x64xf32>
    %c0_43 = arith.constant 0 : index
    %c0_44 = arith.constant 0 : index
    %147 = vector.load %arg11[%c0_43, %c0_44] : memref<1x64xf32, #tpu.memory_space<vmem>>, vector<1x64xf32>
    %148 = vector.broadcast %147 : vector<1x64xf32> to vector<64x64xf32>
    %149 = arith.addf %146, %148 : vector<64x64xf32>
    %cst_45 = arith.constant 0.000000e+00 : f32
    %150 = vector.broadcast %cst_45 : f32 to vector<64x64xf32>
    %151 = arith.maximumf %149, %150 : vector<64x64xf32>
    %152 = arith.truncf %151 : vector<64x64xf32> to vector<64x64xbf16>
    %c0_46 = arith.constant 0 : index
    %c0_47 = arith.constant 0 : index
    %153 = vector.load %arg12[%c0_46, %c0_47] : memref<64x32xbf16, #tpu.memory_space<vmem>>, vector<64x32xbf16>
    %cst_48 = arith.constant dense<0.000000e+00> : vector<64x32xf32>
    %154 = tpu.matmul %152, %153, %cst_48 {dimension_numbers = #tpu.dot_dimension_numbers<[1], [0], [0], [1], [0, 0, 1, 1], [], []>} : vector<64x64xbf16>, vector<64x32xbf16>, vector<64x32xf32> -> vector<64x32xf32>
    %c0_49 = arith.constant 0 : index
    %c0_50 = arith.constant 0 : index
    %155 = vector.load %arg13[%c0_49, %c0_50] : memref<1x32xf32, #tpu.memory_space<vmem>>, vector<1x32xf32>
    %156 = vector.broadcast %155 : vector<1x32xf32> to vector<64x32xf32>
    %157 = arith.addf %154, %156 : vector<64x32xf32>
    %158 = arith.addf %143, %157 : vector<64x32xf32>
    %cst_51 = arith.constant dense<0.000000e+00> : vector<64xf32>
    %159 = vector.multi_reduction <add>, %158, %cst_51 [1] : vector<64x32xf32> to vector<64xf32>
    %160 = vector.shape_cast %159 : vector<64xf32> to vector<64x1xf32>
    %cst_52 = arith.constant 3.200000e+01 : f32
    %161 = vector.broadcast %cst_52 : f32 to vector<64x1xf32>
    %162 = arith.divf %160, %161 : vector<64x1xf32>
    %163 = vector.broadcast %162 : vector<64x1xf32> to vector<64x32xf32>
    %164 = arith.subf %158, %163 : vector<64x32xf32>
    %165 = arith.mulf %164, %164 : vector<64x32xf32>
    %cst_53 = arith.constant dense<0.000000e+00> : vector<64xf32>
    %166 = vector.multi_reduction <add>, %165, %cst_53 [1] : vector<64x32xf32> to vector<64xf32>
    %167 = vector.shape_cast %166 : vector<64xf32> to vector<64x1xf32>
    %cst_54 = arith.constant 3.200000e+01 : f32
    %168 = vector.broadcast %cst_54 : f32 to vector<64x1xf32>
    %169 = arith.divf %167, %168 : vector<64x1xf32>
    %cst_55 = arith.constant 9.99999974E-6 : f32
    %170 = vector.broadcast %cst_55 : f32 to vector<64x1xf32>
    %171 = arith.addf %169, %170 : vector<64x1xf32>
    %172 = math.rsqrt %171 : vector<64x1xf32>
    %173 = vector.broadcast %172 : vector<64x1xf32> to vector<64x32xf32>
    %174 = arith.mulf %164, %173 : vector<64x32xf32>
    %c0_56 = arith.constant 0 : index
    %c0_57 = arith.constant 0 : index
    %175 = vector.load %arg14[%c0_56, %c0_57] : memref<1x32xf32, #tpu.memory_space<vmem>>, vector<1x32xf32>
    %176 = vector.broadcast %175 : vector<1x32xf32> to vector<64x32xf32>
    %177 = arith.mulf %174, %176 : vector<64x32xf32>
    %c0_58 = arith.constant 0 : index
    %c0_59 = arith.constant 0 : index
    %178 = vector.load %arg15[%c0_58, %c0_59] : memref<1x32xf32, #tpu.memory_space<vmem>>, vector<1x32xf32>
    %179 = vector.broadcast %178 : vector<1x32xf32> to vector<64x32xf32>
    %180 = arith.addf %177, %179 : vector<64x32xf32>
    %181 = vector.shape_cast %180 : vector<64x32xf32> to vector<1x4x16x32xf32>
    %c0_60 = arith.constant 0 : index
    %c0_61 = arith.constant 0 : index
    %c0_62 = arith.constant 0 : index
    %c0_63 = arith.constant 0 : index
    %182 = vector.load %arg16[%c0_60, %c0_61, %c0_62, %c0_63] : memref<1x4x16x32xf32, #tpu.memory_space<vmem>>, vector<1x4x16x32xf32>
    tpu.vector_store %arg16[%c0_60, %c0_61, %c0_62, %c0_63], %181 {strides = array<i32>} : memref<1x4x16x32xf32, #tpu.memory_space<vmem>>, vector<1x4x16x32xf32>,
    return
  }
  func.func @transform_0(%arg0: i32, %arg1: i32) -> (i32, i32, i32, i32) {
    %c0_i32 = arith.constant 0 : i32
    %c0_i32_0 = arith.constant 0 : i32
    %c0_i32_1 = arith.constant 0 : i32
    return %arg1, %arg0, %c0_i32, %c0_i32_0 : i32, i32, i32, i32
  }
  func.func @transform_1(%arg0: i32, %arg1: i32) -> (i32, i32, i32) {
    %c0_i32 = arith.constant 0 : i32
    %c0_i32_0 = arith.constant 0 : i32
    %c0_i32_1 = arith.constant 0 : i32
    return %arg0, %c0_i32, %c0_i32_0 : i32, i32, i32
  }
  func.func @transform_2(%arg0: i32, %arg1: i32) -> (i32, i32) {
    %c0_i32 = arith.constant 0 : i32
    %c0_i32_0 = arith.constant 0 : i32
    %c0_i32_1 = arith.constant 0 : i32
    return %c0_i32, %c0_i32_0 : i32, i32
  }
  func.func @transform_3(%arg0: i32, %arg1: i32) -> (i32, i32) {
    %c0_i32 = arith.constant 0 : i32
    %c0_i32_0 = arith.constant 0 : i32
    %c0_i32_1 = arith.constant 0 : i32
    return %c0_i32, %c0_i32_0 : i32, i32
  }
  func.func @transform_4(%arg0: i32, %arg1: i32) -> (i32, i32) {
    %c0_i32 = arith.constant 0 : i32
    %c0_i32_0 = arith.constant 0 : i32
    %c0_i32_1 = arith.constant 0 : i32
    return %c0_i32, %c0_i32_0 : i32, i32
  }
  func.func @transform_5(%arg0: i32, %arg1: i32) -> (i32, i32) {
    %c0_i32 = arith.constant 0 : i32
    %c0_i32_0 = arith.constant 0 : i32
    %c0_i32_1 = arith.constant 0 : i32
    return %c0_i32, %c0_i32_0 : i32, i32
  }
  func.func @transform_6(%arg0: i32, %arg1: i32) -> (i32, i32) {
    %c0_i32 = arith.constant 0 : i32
    %c0_i32_0 = arith.constant 0 : i32
    %c0_i32_1 = arith.constant 0 : i32
    return %c0_i32, %c0_i32_0 : i32, i32
  }
  func.func @transform_7(%arg0: i32, %arg1: i32) -> (i32, i32) {
    %c0_i32 = arith.constant 0 : i32
    %c0_i32_0 = arith.constant 0 : i32
    %c0_i32_1 = arith.constant 0 : i32
    return %c0_i32, %c0_i32_0 : i32, i32
  }
  func.func @transform_8(%arg0: i32, %arg1: i32) -> (i32, i32) {
    %c0_i32 = arith.constant 0 : i32
    %c0_i32_0 = arith.constant 0 : i32
    %c0_i32_1 = arith.constant 0 : i32
    return %c0_i32, %c0_i32_0 : i32, i32
  }
  func.func @transform_9(%arg0: i32, %arg1: i32) -> (i32, i32) {
    %c0_i32 = arith.constant 0 : i32
    %c0_i32_0 = arith.constant 0 : i32
    %c0_i32_1 = arith.constant 0 : i32
    return %c0_i32, %c0_i32_0 : i32, i32
  }
  func.func @transform_10(%arg0: i32, %arg1: i32) -> (i32, i32) {
    %c0_i32 = arith.constant 0 : i32
    %c0_i32_0 = arith.constant 0 : i32
    %c0_i32_1 = arith.constant 0 : i32
    return %c0_i32, %c0_i32_0 : i32, i32
  }
  func.func @transform_11(%arg0: i32, %arg1: i32) -> (i32, i32) {
    %c0_i32 = arith.constant 0 : i32
    %c0_i32_0 = arith.constant 0 : i32
    %c0_i32_1 = arith.constant 0 : i32
    return %c0_i32, %c0_i32_0 : i32, i32
  }
  func.func @transform_12(%arg0: i32, %arg1: i32) -> (i32, i32) {
    %c0_i32 = arith.constant 0 : i32
    %c0_i32_0 = arith.constant 0 : i32
    %c0_i32_1 = arith.constant 0 : i32
    return %c0_i32, %c0_i32_0 : i32, i32
  }
  func.func @transform_13(%arg0: i32, %arg1: i32) -> (i32, i32) {
    %c0_i32 = arith.constant 0 : i32
    %c0_i32_0 = arith.constant 0 : i32
    %c0_i32_1 = arith.constant 0 : i32
    return %c0_i32, %c0_i32_0 : i32, i32
  }
  func.func @transform_14(%arg0: i32, %arg1: i32) -> (i32, i32, i32, i32) {
    %c0_i32 = arith.constant 0 : i32
    %c0_i32_0 = arith.constant 0 : i32
    %c0_i32_1 = arith.constant 0 : i32
    return %arg1, %arg0, %c0_i32, %c0_i32_0 : i32, i32, i32, i32
  }
}

</mosaic_0001>

<bundles_post_ra>
// kernel: forward.1
= control target key start
LH: loop header
LB: loop body
LE: loop exit
PB: predicated region body
PF: predicated region fallthrough
CT: control target
= control target key end

     0   :  { %s4310_s29 = smov 0   ;;  %s4312_s30 = smov 0   ;;  %s5140_s0 = inlined_call_operand.vmem [shape: f32[2,4,16,32], index: 0, kind: input, shape index: {}]   ;;  %s5141_s1 = inlined_call_operand.vmem [shape: f32[4,16,16], index: 1, kind: input, shape index: {}]   ;;  %s5142_s2 = inlined_call_operand.vmem [shape: bf16[32,96], index: 2, kind: input, shape index: {}]   ;;  %s5143_s3 = inlined_call_operand.vmem [shape: f32[1,96], index: 3, kind: input, shape index: {}]   ;;  %s5144_s4 = inlined_call_operand.vmem [shape: bf16[32,32], index: 4, kind: input, shape index: {}]   ;;  %s5145_s5 = inlined_call_operand.vmem [shape: f32[1,32], index: 5, kind: input, shape index: {}]   ;;  %s5146_s6 = inlined_call_operand.vmem [shape: f32[1,32], index: 6, kind: input, shape index: {}]   ;;  %s5147_s7 = inlined_call_operand.vmem [shape: f32[1,32], index: 7, kind: input, shape index: {}]   ;;  %s5148_s8 = inlined_call_operand.vmem [shape: bf16[32,64], index: 8, kind: input, shape index: {}]   ;;  %s5149_s9 = inlined_call_operand.vmem [shape: f32[1,64], index: 9, kind: input, shape index: {}]   ;;  %s5150_s10 = inlined_call_operand.vmem [shape: bf16[64,32], index: 10, kind: input, shape index: {}]   ;;  %s5151_s11 = inlined_call_operand.vmem [shape: f32[1,32], index: 11, kind: input, shape index: {}]   ;;  %s5152_s12 = inlined_call_operand.vmem [shape: f32[1,32], index: 12, kind: input, shape index: {}]   ;;  %s5153_s13 = inlined_call_operand.vmem [shape: f32[1,32], index: 13, kind: input, shape index: {}]   ;;  %s5154_s14 = inlined_call_operand.vmem [shape: f32[2,4,16,32], index: 14, kind: output, shape index: {}]  }
   0x1   :  { %s4314_s15 = smov 0  }
   0x2 LB: > { %s33_s16 = sadd.s32 1, %s4213_s30  ;;  %p3496_p0 = scmp.ge.s32.totalorder %s4217_s15, 1  ;;  %s4217_s15 = sphi %s4314_s15, %s24_s15   ;;  %s4213_s30 = sphi %s4312_s30, %s5156_s30   ;;  %s4209_s29 = sphi %s4310_s29, %s5155_s29  }
   0x3   : > { %p34_p1 = scmp.ge.s32.totalorder %s33_s16, 2  ;;  %p446_p2 = scmp.lt.s32.totalorder %s4217_s15, 3 }
   0x5   : > { %s5158_s16 = smov (%p34_p1, %s33_s16), 0  ;;  %p447_p3 = pnand %p3496_p0, %p446_p2 }
   0x6   : > { %v4009_v0 = vld [vmem:[%s5142_s2] sm:$0xff] (!%p447_p3)   ;;  %p509_p4 = scmp.lt.s32.totalorder (!%p447_p3), %s4209_s29, 1  ;;  %v4010_v1 = vld [vmem:[%s5142_s2 + $0x8] sm:$0xff] (!%p447_p3)   ;;  %vm573_vm0 = vcmask (!%p447_p3), 261120   ;;  %v4219_v14 = vmov (!%p447_p3), 0.0   ;;  %vm4220_vm1 = vmmov (!%p447_p3), 0  }
   0x7   : > { %450 = sbr.rel (%p447_p3) target bundleno = 4256 (0x10a0), region = 76  ;;  %3661 = vmatprep.subr.bf16.mxu0 (!%p447_p3), %v4009_v0  ;;  %3905 = vmatprep.subr.bf16.mxu1 (!%p447_p3), %v4009_v0  ;;  %v3501_v16 = vld [vmem:[%s5143_s3] ss:$0 sm:$0xff] (!%p447_p3)  ;;  %s4221_s27 = smov (!%p447_p3), 96   ;;  %vm666_vm2 = vcmask (!%p447_p3), 64512   ;;  %vm872_vm3 = vcmask (!%p447_p3), 130048  }
   0x8   : > { %3662 = vmatpush3.bf16.msra.mxu0 (!%p447_p3), %v4009_v0  ;;  %3907 = vmatpush3.bf16.msra.mxu1 (!%p447_p3), %v4009_v0  ;;  %v4404_v44 = vld [vmem:[%s5141_s1] sm:$0xff] (!%p447_p3)  ;;  %v4415_v50 = vld [vmem:[%s5141_s1 + $0x8] sm:$0xff] (!%p447_p3)  ;;  %v4424_v60 = vld [vmem:[%s5141_s1 + $0x10] sm:$0xff] (!%p447_p3)  ;;  %s4222_s23 = smov (!%p447_p3), 64   ;;  %s4223_s25 = smov (!%p447_p3), 88   ;;  %vm2741_vm4 = vcmask (!%p447_p3), 195584  }
   0x9   : > { %3663 = vmatprep.subr.bf16.mxu0 (!%p447_p3), %v4010_v1  ;;  %3906 = vmatprep.subr.bf16.mxu1 (!%p447_p3), %v4010_v1  ;;  %v4409_v45 = vld [vmem:[%s5141_s1 + $0x20] sm:$0xff] (!%p447_p3)  ;;  %v4430_v63 = vld [vmem:[%s5141_s1 + $0x18] sm:$0xff] (!%p447_p3)  ;;  %s4224_s26 = smov (!%p447_p3), 120   ;;  %s4226_s28 = smov (!%p447_p3), 80   ;;  %vm3152_vm5 = vcmask (!%p447_p3), 523264  }
   0xa   : > { %s4227_s17 = smov (!%p447_p3), 112   ;;  %s4228_s18 = smov (!%p447_p3), 48  }
   0xb   : > { %s4229_s19 = smov (!%p447_p3), 72   ;;  %s4230_s20 = smov (!%p447_p3), 104  }
   0xc   : > { %3664 = vmatpush3.bf16.msra.mxu0 (!%p447_p3), %v4010_v1  ;;  %3908 = vmatpush3.bf16.msra.mxu1 (!%p447_p3), %v4010_v1 }
   0xd   : > { %3673 = vmatprep.subr.bf16.mxu1 (!%p447_p3), %v4219_v14  ;;  %3685 = vmatprep.subr.bf16.mxu0 (!%p447_p3), %v4219_v14 }
   0xe   : > { %s5160_s29 = smov (!%p509_p4, %s4209_s29), 1 }
   0xf   : > { %s3569_s21 = sshll.u32 %s5160_s29, 6 }
  0x10   : > { %s4342_s24 = scalar_lea.vmem %s5140_s0, %s3569_s21 }
  0x11   : > { %v538_v2 = vld [vmem:[%s4342_s24] sm:$0xff]  ;;  %v539_v3 = vld [vmem:[%s4342_s24 + $0x8] sm:$0xff]  ;;  %v540_v7 = vld [vmem:[%s4342_s24 + $0x10] sm:$0xff] }
  0x12   : > { %v542_v4 = vld [vmem:[%s4342_s24 + $0x20] sm:$0xff]  ;;  %v546_v5 = vpack.c.bf16 %v539_v3, %v538_v2  ;;  %v543_v6 = vld [vmem:[%s4342_s24 + $0x28] sm:$0xff]  ;;  %v541_v8 = vld [vmem:[%s4342_s24 + $0x18] sm:$0xff] }
  0x13   : > { %v548_v9 = vpack.c.bf16 %v543_v6, %v542_v4  ;;  %v547_v10 = vpack.c.bf16 %v541_v8, %v540_v7  ;;  %v544_v11 = vld [vmem:[%s4342_s24 + $0x30] sm:$0xff]  ;;  %v545_v12 = vld [vmem:[%s4342_s24 + $0x38] sm:$0xff]  ;;  %v4438_v6 = vld [vmem:[%s5141_s1 + $0x28] sm:$0xff] }
  0x14   : > { %3665 = vmatprep.mubr.msk.bf16.mxu0 %vm573_vm0, %v546_v5  ;;  %v549_v13 = vpack.c.bf16 %v545_v12, %v544_v11  ;;  %v4443_v7 = vld [vmem:[%s5141_s1 + $0x30] sm:$0xff]  ;;  %v4450_v11 = vld [vmem:[%s5141_s1 + $0x38] sm:$0xff] }
  0x15   : > { %3669 = vmatprep.mubr.msk.bf16.mxu1 %vm573_vm0, %v548_v9  ;;  %3666 = vmatmul.mubr.msk.bf16.vlgmr.msra.gmra.mrb[0].mxu0 %vm573_vm0, %v547_v10 }
  0x16   : > { %3670 = vmatmul.mubr.msk.bf16.vlgmr.msra.gmra.mrb[0].mxu1 %vm573_vm0, %v549_v13  ;;  %3687 = vmatprep.mubr.msk.bf16.mxu0 %vm4220_vm1, %v4219_v14 }
  0x17   : > { %3675 = vmatprep.mubr.msk.bf16.mxu1 %vm4220_vm1, %v4219_v14 }
  0xe8   : > { %v3667_v15 = vpop.f32.mrb[0].mxu0 }
  0xe9   : > { %v3671_v17 = vpop.f32.mrb[0].mxu1  ;;  %v620_v18 = vpop.f32.mrb[1].mxu0  ;;  %v629_v22 = vadd.f32 %v3667_v15, %v3501_v16 }
  0xea   : > { %v645_v19 = vadd.f32 %v3671_v17, %v3501_v16  ;;  %v636_v20 = vpop.f32.mrb[1].mxu1  ;;  %v3668_v21 = vpop.f32.mrb[2].mxu0  ;;  %v621_v27 = vadd.f32 %v3501_v16, %v620_v18 }
  0xeb   : > { %v637_v23 = vadd.f32 %v3501_v16, %v636_v20  ;;  %v632_v24 = vadd.f32 %v3668_v21, %v3501_v16  ;;  %v3672_v25 = vpop.f32.mrb[2].mxu1  ;;  %v623_v26 = vpop.f32.mrb[3].mxu0 }
  0xec   : > { %v648_v28 = vadd.f32 %v3672_v25, %v3501_v16  ;;  %v624_v29 = vadd.f32 %v3501_v16, %v623_v26  ;;  %v639_v30 = vpop.f32.mrb[3].mxu1 }
  0xed   : > { %v4365_v31 = vpack.c.bf16 %v632_v24, %v629_v22  ;;  %v640_v32 = vadd.f32 %v3501_v16, %v639_v30 }
  0xee   : > { %v4367_v33 = vpack.c.bf16 %v648_v28, %v645_v19  ;;  %v4369_v34 = vpack.c.bf16 %v624_v29, %v621_v27 }
  0xef   : > { %v4371_v35 = vpack.c.bf16 %v640_v32, %v637_v23 }
  0xf0   : > { %664 = vrot.lane.b32.xlu0 %v4369_v34, %s4221_s27 }
  0xf1   : > { %765 = vrot.lane.b32.xlu1 %v4371_v35, %s4221_s27 }
  0xf4   : > { %715 = vrot.lane.b32.xlu0 %v4365_v31, %s4221_s27 }
  0xf5   : > { %815 = vrot.lane.b32.xlu1 %v4367_v33, %s4221_s27  ;;  %s4225_s27 = smov 56  }
 0x162   : > { %v665_v36 = vpop.permute.xlu0 %664 }
 0x163   : > { %v766_v37 = vpop.permute.xlu1 %765  ;;  %v671_v38 = vsel %vm666_vm2, %v665_v36, 0 }
 0x164   : > { %v771_v39 = vsel %vm666_vm2, %v766_v37, 0  ;;  %3674 = vmatpush3.bf16.xpose.msra.mxu1 %v671_v38 }
 0x165   : > { %3686 = vmatpush3.bf16.xpose.msra.mxu0 %v771_v39  ;;  %3679 = vmatprep.subr.bf16.mxu1 %v4219_v14 }
 0x166   : > { %3697 = vmatprep.subr.bf16.mxu0 %v4219_v14  ;;  %v716_v40 = vpop.permute.xlu0 %715 }
 0x167   : > { %v721_v41 = vsel %vm666_vm2, %v716_v40, 0  ;;  %v816_v42 = vpop.permute.xlu1 %815 }
 0x168   : > { %v821_v43 = vsel %vm666_vm2, %v816_v42, 0 }
 0x16b   : > { %3676 = vmatmul.mubr.msk.bf16.vlgmr.msra.gmra.mrb[4].mxu1 %vm666_vm2, %v4369_v34 }
 0x16c   : > { %3688 = vmatmul.mubr.msk.bf16.vlgmr.msra.gmra.mrb[4].mxu0 %vm666_vm2, %v4371_v35  ;;  %3680 = vmatpush3.bf16.xpose.msra.mxu1 %v721_v41 }
 0x16d   : > { %3681 = vmatprep.mubr.msk.bf16.mxu1 %vm4220_vm1, %v4219_v14  ;;  %3691 = vmatprep.subr.bf16.mxu1 %v4219_v14 }
 0x16e   : > { %3699 = vmatprep.mubr.msk.bf16.mxu0 %vm4220_vm1, %v4219_v14 }
 0x173   : > { %3682 = vmatmul.mubr.msk.bf16.vlgmr.msra.gmra.mrb[8].mxu1 %vm666_vm2, %v4365_v31 }
 0x174   : > { %3692 = vmatpush3.bf16.xpose.msra.mxu1 %v821_v43  ;;  %3693 = vmatprep.mubr.msk.bf16.mxu1 %vm4220_vm1, %v4219_v14 }
 0x175   : > { %3703 = vmatprep.subr.bf16.mxu1 %v4219_v14 }
 0x17b   : > { %3694 = vmatmul.mubr.msk.bf16.vlgmr.msra.gmra.mrb[12].mxu1 %vm666_vm2, %v4367_v33 }
 0x17c   : > { %3705 = vmatprep.mubr.msk.bf16.mxu1 %vm4220_vm1, %v4219_v14 }
 0x23e   : > { %v707_v46 = vpop.f32.mrb[4].mxu1 }
 0x23f   : > { %v864_v47 = vadd.f32 %v707_v46, %v4404_v44  ;;  %v807_v48 = vpop.f32.mrb[4].mxu0  ;;  %v3677_v49 = vpop.f32.mrb[5].mxu1 }
 0x240   : > { %v868_v51 = vadd.f32 %v807_v48, %v4409_v45  ;;  %v3689_v52 = vpop.f32.mrb[5].mxu0  ;;  %v710_v53 = vpop.f32.mrb[6].mxu1 }
 0x241   : > { %v810_v54 = vpop.f32.mrb[6].mxu0  ;;  %v3678_v55 = vpop.f32.mrb[7].mxu1  ;;  %v873_v56 = vsel %vm872_vm3, %v864_v47, -inf  ;;  %v865_v57 = vadd.f32 %v710_v53, %v4415_v50 }
 0x242   : > { %v3690_v58 = vpop.f32.mrb[7].mxu0  ;;  %v885_v59 = vsel %vm872_vm3, %v868_v51, -inf  ;;  %874 = vmax.xlane.f32.xlu0 %v873_v56  ;;  %v869_v8 = vadd.f32 %v810_v54, %v4438_v6 }
 0x243   : > { %886 = vmax.xlane.f32.xlu1 %v885_v59  ;;  %v876_v61 = vsel %vm872_vm3, %v865_v57, -inf }
 0x244   : > { %v888_v18 = vsel %vm872_vm3, %v869_v8, -inf }
 0x246   : > { %v757_v62 = vpop.f32.mrb[8].mxu1 }
 0x247   : > { %877 = vmax.xlane.f32.xlu1 %v876_v61  ;;  %v866_v0 = vadd.f32 %v757_v62, %v4424_v60  ;;  %v3683_v1 = vpop.f32.mrb[9].mxu1 }
 0x248   : > { %v760_v2 = vpop.f32.mrb[10].mxu1 }
 0x249   : > { %v867_v3 = vadd.f32 %v760_v2, %v4430_v63  ;;  %v3684_v4 = vpop.f32.mrb[11].mxu1  ;;  %v879_v5 = vsel %vm872_vm3, %v866_v0, -inf }
 0x24a   : > { %880 = vmax.xlane.f32.xlu0 %v879_v5 }
 0x24b   : > { %v882_v9 = vsel %vm872_vm3, %v867_v3, -inf }
 0x24e   : > { %883 = vmax.xlane.f32.xlu0 %v882_v9  ;;  %v857_v10 = vpop.f32.mrb[12].mxu1 }
 0x24f   : > { %v4453_v12 = vadd.f32 %v857_v10, %v4443_v7  ;;  %v3695_v13 = vpop.f32.mrb[13].mxu1 }
 0x250   : > { %v860_v15 = vpop.f32.mrb[14].mxu1 }
 0x251   : > { %v4456_v16 = vadd.f32 %v860_v15, %v4450_v11  ;;  %v3696_v17 = vpop.f32.mrb[15].mxu1  ;;  %v891_v19 = vsel %vm872_vm3, %v4453_v12, -inf }
 0x252   : > { %889 = vmax.xlane.f32.xlu0 %v888_v18  ;;  %892 = vmax.xlane.f32.xlu1 %v891_v19 }
 0x253   : > { %v894_v20 = vsel %vm872_vm3, %v4456_v16, -inf }
 0x256   : > { %895 = vmax.xlane.f32.xlu0 %v894_v20 }
 0x263   : > { %965 = vrot.lane.b32.xlu1 %v4369_v34, %s4222_s23 }
 0x2cf   : > { %v875_v21 = vpop.xlane.xlu0 %874 }
 0x2d0   : > { %v887_v22 = vpop.xlane.xlu1 %886  ;;  %v897_v23 = vsub.f32 %v864_v47, %v875_v21 }
 0x2d1   : > { %v901_v24 = vsub.f32 %v868_v51, %v887_v22 }
 0x2d2   : > { %v905_v25 = vmul.f32 1.442695, %v897_v23 }
 0x2d3   : > { %v913_v26 = vmul.f32 1.442695, %v901_v24 }
 0x2d4   : > { %4019 = vpow2.f32 %v905_v25  ;;  %v878_v27 = vpop.xlane.xlu1 %877 }
 0x2d5   : > { %v898_v28 = vsub.f32 %v865_v57, %v878_v27  ;;  %4021 = vpow2.f32 %v913_v26 }
 0x2d7   : > { %v907_v29 = vmul.f32 1.442695, %v898_v28  ;;  %v881_v30 = vpop.xlane.xlu0 %880 }
 0x2d8   : > { %v899_v32 = vsub.f32 %v866_v0, %v881_v30 }
 0x2d9   : > { %4023 = vpow2.f32 %v907_v29 }
 0x2da   : > { %v909_v36 = vmul.f32 1.442695, %v899_v32 }
 0x2db   : > { %v884_v37 = vpop.xlane.xlu0 %883 }
 0x2dc   : > { %4025 = vpow2.f32 %v909_v36  ;;  %v900_v39 = vsub.f32 %v867_v3, %v884_v37 }
 0x2de   : > { %v4465_v38 = vpop.eup %4019  ;;  %v911_v49 = vmul.f32 1.442695, %v900_v39 }
 0x2df   : > { %v893_v40 = vpop.xlane.xlu1 %892  ;;  %v890_v41 = vpop.xlane.xlu0 %889  ;;  %v921_v42 = vsel %vm872_vm3, %v4465_v38, 0.0 }
 0x2e0   : > { %v4469_v43 = vpop.eup %4021  ;;  %v902_v46 = vsub.f32 %v869_v8, %v890_v41  ;;  %922 = vadd.xlane.f32.xlu1 %v921_v42  ;;  %v903_v61 = vsub.f32 %v4453_v12, %v893_v40 }
 0x2e1   : > { %v933_v52 = vsel %vm872_vm3, %v4469_v43, 0.0 }
 0x2e2   : > { %v915_v47 = vmul.f32 1.442695, %v902_v46  ;;  %v917_v62 = vmul.f32 1.442695, %v903_v61 }
 0x2e3   : > { %v4024_v48 = vpop.eup %4023  ;;  %v966_v51 = vpop.permute.xlu1 %965 }
 0x2e4   : > { %3698 = vmatpush3.bf16.msra.mxu0 %v966_v51  ;;  %v924_v53 = vsel %vm872_vm3, %v4024_v48, 0.0  ;;  %934 = vadd.xlane.f32.xlu1 %v933_v52  ;;  %4027 = vpow2.f32 %v915_v47  ;;  %v896_v0 = vpop.xlane.xlu0 %895 }
 0x2e5   : > { %925 = vadd.xlane.f32.xlu0 %v924_v53  ;;  %3709 = vmatprep.subr.bf16.mxu0 %v4219_v14  ;;  %4029 = vpow2.f32 %v911_v49  ;;  %v904_v1 = vsub.f32 %v4456_v16, %v896_v0 }
 0x2e6   : > { %v4475_v54 = vpop.eup %4025  ;;  %4031 = vpow2.f32 %v917_v62 }
 0x2e7   : > { %v927_v55 = vsel %vm872_vm3, %v4475_v54, 0.0  ;;  %v919_v2 = vmul.f32 1.442695, %v904_v1 }
 0x2e8   : > { %928 = vadd.xlane.f32.xlu1 %v927_v55 }
 0x2e9   : > { %4033 = vpow2.f32 %v919_v2 }
 0x2ee   : > { %v4028_v56 = vpop.eup %4027 }
 0x2ef   : > { %v936_v57 = vsel %vm872_vm3, %v4028_v56, 0.0  ;;  %v4480_v58 = vpop.eup %4029 }
 0x2f0   : > { %937 = vadd.xlane.f32.xlu0 %v936_v57  ;;  %v930_v59 = vsel %vm872_vm3, %v4480_v58, 0.0  ;;  %v4492_v3 = vpop.eup %4031 }
 0x2f1   : > { %v939_v4 = vsel %vm872_vm3, %v4492_v3, 0.0 }
 0x2f3   : > { %v4496_v5 = vpop.eup %4033 }
 0x2f4   : > { %931 = vadd.xlane.f32.xlu0 %v930_v59  ;;  %v942_v8 = vsel %vm872_vm3, %v4496_v5, 0.0 }
 0x2f9   : > { %1059 = vrot.lane.b32.xlu1 %v4371_v35, %s4222_s23 }
 0x2fd   : > { %1106 = vrot.lane.b32.xlu1 %v4367_v33, %s4222_s23 }
 0x30a   : > { %1012 = vrot.lane.b32.xlu0 %v4365_v31, %s4222_s23 }
 0x321   : > { %940 = vadd.xlane.f32.xlu1 %v939_v4 }
 0x329   : > { %943 = vadd.xlane.f32.xlu0 %v942_v8 }
 0x332   : > { %1206 = vrot.lane.b32.xlu1 %v4365_v31, %s4223_s25 }
 0x336   : > { %1257 = vrot.lane.b32.xlu1 %v4371_v35, %s4223_s25 }
 0x33a   : > { %1308 = vrot.lane.b32.xlu1 %v4367_v33, %s4223_s25 }
 0x33e   : > { %1306 = vrot.lane.b32.xlu1 %v4367_v33, %s4224_s26 }
 0x33f   : > { %1155 = vrot.lane.b32.xlu0 %v4369_v34, %s4223_s25 }
 0x343   : > { %1153 = vrot.lane.b32.xlu0 %v4369_v34, %s4224_s26 }
 0x347   : > { %1204 = vrot.lane.b32.xlu0 %v4365_v31, %s4224_s26 }
 0x34b   : > { %1255 = vrot.lane.b32.xlu0 %v4371_v35, %s4224_s26  ;;  %s4234_s26 = smov 24  }
 0x36d   : > { %v923_v9 = vpop.xlane.xlu1 %922 }
 0x36e   : > { %4035 = vrcp.f32 %v923_v9 }
 0x371   : > { %v935_v12 = vpop.xlane.xlu1 %934 }
 0x372   : > { %v926_v10 = vpop.xlane.xlu0 %925 }
 0x373   : > { %4037 = vrcp.f32 %v926_v10 }
 0x374   : > { %4039 = vrcp.f32 %v935_v12 }
 0x375   : > { %v929_v15 = vpop.xlane.xlu1 %928 }
 0x378   : > { %v4036_v13 = vpop.eup %4035 }
 0x379   : > { %v953_v17 = vmul.f32 %v4036_v13, %v4465_v38  ;;  %v1060_v21 = vpop.permute.xlu1 %1059 }
 0x37d   : > { %v4038_v16 = vpop.eup %4037  ;;  %v938_v19 = vpop.xlane.xlu0 %937 }
 0x37e   : > { %v954_v18 = vmul.f32 %v4038_v16, %v4024_v48  ;;  %4041 = vrcp.f32 %v938_v19  ;;  %v4040_v24 = vpop.eup %4039  ;;  %v1107_v38 = vpop.permute.xlu1 %1106 }
 0x37f   : > { %4043 = vrcp.f32 %v929_v15  ;;  %v957_v26 = vmul.f32 %v4040_v24, %v4469_v43 }
 0x380   : > { %v961_v20 = vpack.c.bf16 %v954_v18, %v953_v17 }
 0x381   : > { %v932_v22 = vpop.xlane.xlu0 %931 }
 0x382   : > { %3700 = vmatmul.mubr.msk.bf16.vlgmr.msra.gmra.mrb[8].mxu0 %vm872_vm3, %v961_v20  ;;  %4045 = vrcp.f32 %v932_v22 }
 0x383   : > { %3710 = vmatpush3.bf16.msra.mxu0 %v1060_v21  ;;  %3711 = vmatprep.mubr.msk.bf16.mxu0 %vm4220_vm1, %v4219_v14 }
 0x384   : > { %3721 = vmatprep.subr.bf16.mxu0 %v4219_v14 }
 0x385   : > { %v1013_v23 = vpop.permute.xlu0 %1012 }
 0x386   : > { %3704 = vmatpush3.bf16.msra.mxu1 %v1013_v23 }
 0x387   : > { %3715 = vmatprep.subr.bf16.mxu1 %v4219_v14 }
 0x388   : > { %v4042_v25 = vpop.eup %4041 }
 0x389   : > { %v958_v27 = vmul.f32 %v4042_v25, %v4028_v56  ;;  %v4044_v28 = vpop.eup %4043 }
 0x38a   : > { %v955_v32 = vmul.f32 %v4044_v28, %v4475_v54 }
 0x38b   : > { %v963_v29 = vpack.c.bf16 %v958_v27, %v957_v26 }
 0x38c   : > { %v4046_v30 = vpop.eup %4045 }
 0x38d   : > { %v956_v36 = vmul.f32 %v4046_v30, %v4480_v58  ;;  %3712 = vmatmul.mubr.msk.bf16.vlgmr.msra.gmra.mrb[12].mxu0 %vm872_vm3, %v963_v29 }
 0x38e   : > { %3723 = vmatprep.mubr.msk.bf16.mxu0 %vm4220_vm1, %v4219_v14 }
 0x38f   : > { %v962_v37 = vpack.c.bf16 %v956_v36, %v955_v32 }
 0x391   : > { %3706 = vmatmul.mubr.msk.bf16.vlgmr.msra.gmra.mrb[16].mxu1 %vm872_vm3, %v962_v37 }
 0x392   : > { %3716 = vmatpush3.bf16.msra.mxu1 %v1107_v38  ;;  %3717 = vmatprep.mubr.msk.bf16.mxu1 %vm4220_vm1, %v4219_v14 }
 0x393   : > { %3727 = vmatprep.subr.bf16.mxu1 %v4219_v14 }
 0x3ae   : > { %v941_v39 = vpop.xlane.xlu1 %940 }
 0x3af   : > { %4047 = vrcp.f32 %v941_v39 }
 0x3b2   : > { %v1207_v41 = vpop.permute.xlu1 %1206 }
 0x3b3   : > { %v1212_v56 = vsel %vm666_vm2, %v1207_v41, 0 }
 0x3b6   : > { %v944_v40 = vpop.xlane.xlu0 %943  ;;  %v1258_v48 = vpop.permute.xlu1 %1257 }
 0x3b7   : > { %4049 = vrcp.f32 %v944_v40  ;;  %v1263_v53 = vsel %vm666_vm2, %v1258_v48, 0 }
 0x3b9   : > { %v4048_v47 = vpop.eup %4047 }
 0x3ba   : > { %v1156_v42 = vpop.permute.xlu0 %1155  ;;  %v959_v51 = vmul.f32 %v4048_v47, %v4492_v3  ;;  %v1309_v58 = vpop.permute.xlu1 %1308 }
 0x3bb   : > { %v1161_v43 = vsel %vm666_vm2, %v1156_v42, 0  ;;  %v1314_v59 = vsel %vm666_vm2, %v1309_v58, 0 }
 0x3bc   : > { %3722 = vmatpush3.bf16.xpose.msra.mxu0 %v1161_v43 }
 0x3bd   : > { %3733 = vmatprep.subr.bf16.mxu0 %v4219_v14 }
 0x3be   : > { %v1154_v46 = vpop.permute.xlu0 %1153  ;;  %v1307_v61 = vpop.permute.xlu1 %1306 }
 0x3c1   : > { %v4050_v49 = vpop.eup %4049 }
 0x3c2   : > { %v960_v52 = vmul.f32 %v4050_v49, %v4496_v5  ;;  %v1205_v54 = vpop.permute.xlu0 %1204 }
 0x3c3   : > { %3724 = vmatmul.mubr.msk.bf16.vlgmr.msra.gmra.mrb[16].mxu0 %vm666_vm2, %v1154_v46 }
 0x3c4   : > { %3734 = vmatpush3.bf16.xpose.msra.mxu0 %v1263_v53  ;;  %v964_v55 = vpack.c.bf16 %v960_v52, %v959_v51  ;;  %3735 = vmatprep.mubr.msk.bf16.mxu0 %vm4220_vm1, %v4219_v14 }
 0x3c5   : > { %3745 = vmatprep.subr.bf16.mxu0 %v4219_v14 }
 0x3c6   : > { %3718 = vmatmul.mubr.msk.bf16.vlgmr.msra.gmra.mrb[20].mxu1 %vm872_vm3, %v964_v55  ;;  %v1256_v57 = vpop.permute.xlu0 %1255 }
 0x3c7   : > { %3728 = vmatpush3.bf16.xpose.msra.mxu1 %v1212_v56  ;;  %3729 = vmatprep.mubr.msk.bf16.mxu1 %vm4220_vm1, %v4219_v14 }
 0x3c8   : > { %3739 = vmatprep.subr.bf16.mxu1 %v4219_v14 }
 0x3cb   : > { %3736 = vmatmul.mubr.msk.bf16.vlgmr.msra.gmra.mrb[20].mxu0 %vm666_vm2, %v1256_v57 }
 0x3cc   : > { %3747 = vmatprep.mubr.msk.bf16.mxu0 %vm4220_vm1, %v4219_v14 }
 0x3ce   : > { %3730 = vmatmul.mubr.msk.bf16.vlgmr.msra.gmra.mrb[24].mxu1 %vm666_vm2, %v1205_v54 }
 0x3cf   : > { %3740 = vmatpush3.bf16.xpose.msra.mxu1 %v1314_v59  ;;  %3741 = vmatprep.mubr.msk.bf16.mxu1 %vm4220_vm1, %v4219_v14 }
 0x3d0   : > { %3751 = vmatprep.subr.bf16.mxu1 %v4219_v14 }
 0x3d6   : > { %3742 = vmatmul.mubr.msk.bf16.vlgmr.msra.gmra.mrb[28].mxu1 %vm666_vm2, %v1307_v61 }
 0x3d7   : > { %3753 = vmatprep.mubr.msk.bf16.mxu1 %vm4220_vm1, %v4219_v14 }
 0x455   : > { %v4549_v62 = vpop.f32.mrb[8].mxu0 }
 0x456   : > { %v3701_v0 = vpop.f32.mrb[9].mxu0 }
 0x457   : > { %v4551_v1 = vpop.f32.mrb[10].mxu0 }
 0x458   : > { %v3702_v2 = vpop.f32.mrb[11].mxu0 }
 0x460   : > { %v4553_v3 = vpop.f32.mrb[12].mxu0 }
 0x461   : > { %v3713_v4 = vpop.f32.mrb[13].mxu0 }
 0x462   : > { %v4555_v5 = vpop.f32.mrb[14].mxu0 }
 0x463   : > { %v3714_v8 = vpop.f32.mrb[15].mxu0 }
 0x464   : > { %v4557_v9 = vpop.f32.mrb[16].mxu1 }
 0x465   : > { %v3707_v10 = vpop.f32.mrb[17].mxu1 }
 0x466   : > { %v4559_v12 = vpop.f32.mrb[18].mxu1 }
 0x467   : > { %v3708_v13 = vpop.f32.mrb[19].mxu1 }
 0x496   : > { %v1197_v15 = vpop.f32.mrb[16].mxu0 }
 0x497   : > { %v1357_v16 = vadd.f32 %v1197_v15, %v4404_v44  ;;  %v3725_v17 = vpop.f32.mrb[17].mxu0 }
 0x498   : > { %v1200_v18 = vpop.f32.mrb[18].mxu0 }
 0x499   : > { %v1358_v19 = vadd.f32 %v1200_v18, %v4415_v50  ;;  %v4563_v20 = vpop.f32.mrb[20].mxu1  ;;  %v3726_v21 = vpop.f32.mrb[19].mxu0  ;;  %v1365_v22 = vsel %vm872_vm3, %v1357_v16, -inf }
 0x49a   : > { %v3719_v23 = vpop.f32.mrb[21].mxu1  ;;  %1366 = vmax.xlane.f32.xlu0 %v1365_v22 }
 0x49b   : > { %v4566_v24 = vpop.f32.mrb[22].mxu1  ;;  %v1368_v25 = vsel %vm872_vm3, %v1358_v19, -inf }
 0x49c   : > { %v3720_v26 = vpop.f32.mrb[23].mxu1  ;;  %1369 = vmax.xlane.f32.xlu1 %v1368_v25 }
 0x49e   : > { %v1299_v27 = vpop.f32.mrb[20].mxu0 }
 0x49f   : > { %v1361_v28 = vadd.f32 %v1299_v27, %v4409_v45  ;;  %v3737_v29 = vpop.f32.mrb[21].mxu0 }
 0x4a0   : > { %v1302_v30 = vpop.f32.mrb[22].mxu0 }
 0x4a1   : > { %v1248_v32 = vpop.f32.mrb[24].mxu1  ;;  %v3738_v36 = vpop.f32.mrb[23].mxu0  ;;  %v1377_v37 = vsel %vm872_vm3, %v1361_v28, -inf  ;;  %v1362_v46 = vadd.f32 %v1302_v30, %v4438_v6 }
 0x4a2   : > { %v1359_v38 = vadd.f32 %v1248_v32, %v4424_v60  ;;  %v3731_v39 = vpop.f32.mrb[25].mxu1  ;;  %1378 = vmax.xlane.f32.xlu1 %v1377_v37 }
 0x4a3   : > { %v1251_v40 = vpop.f32.mrb[26].mxu1  ;;  %v1380_v56 = vsel %vm872_vm3, %v1362_v46, -inf }
 0x4a4   : > { %v1360_v41 = vadd.f32 %v1251_v40, %v4430_v63  ;;  %v3732_v42 = vpop.f32.mrb[27].mxu1  ;;  %v1371_v43 = vsel %vm872_vm3, %v1359_v38, -inf }
 0x4a5   : > { %1372 = vmax.xlane.f32.xlu0 %v1371_v43 }
 0x4a6   : > { %v1374_v47 = vsel %vm872_vm3, %v1360_v41, -inf }
 0x4a9   : > { %1375 = vmax.xlane.f32.xlu0 %v1374_v47  ;;  %v1350_v48 = vpop.f32.mrb[28].mxu1 }
 0x4aa   : > { %v1363_v49 = vadd.f32 %v1350_v48, %v4443_v7  ;;  %v3743_v51 = vpop.f32.mrb[29].mxu1 }
 0x4ab   : > { %v1353_v52 = vpop.f32.mrb[30].mxu1 }
 0x4ac   : > { %v1364_v53 = vadd.f32 %v1353_v52, %v4450_v11  ;;  %v3744_v54 = vpop.f32.mrb[31].mxu1  ;;  %v1383_v55 = vsel %vm872_vm3, %v1363_v49, -inf }
 0x4ad   : > { %1384 = vmax.xlane.f32.xlu1 %v1383_v55  ;;  %1381 = vmax.xlane.f32.xlu0 %v1380_v56 }
 0x4ae   : > { %v1386_v57 = vsel %vm872_vm3, %v1364_v53, -inf }
 0x4b1   : > { %1387 = vmax.xlane.f32.xlu0 %v1386_v57 }
 0x4be   : > { %1457 = vrot.lane.b32.xlu1 %v4369_v34, %s4225_s27 }
 0x4c2   : > { %1551 = vrot.lane.b32.xlu1 %v4371_v35, %s4225_s27 }
 0x4c6   : > { %1598 = vrot.lane.b32.xlu1 %v4367_v33, %s4225_s27 }
 0x4c7   : > { %1504 = vrot.lane.b32.xlu0 %v4365_v31, %s4225_s27 }
 0x527   : > { %v1367_v58 = vpop.xlane.xlu0 %1366 }
 0x528   : > { %v1389_v59 = vsub.f32 %v1357_v16, %v1367_v58 }
 0x529   : > { %v1370_v61 = vpop.xlane.xlu1 %1369 }
 0x52a   : > { %v1397_v0 = vmul.f32 1.442695, %v1389_v59  ;;  %v1390_v2 = vsub.f32 %v1358_v19, %v1370_v61 }
 0x52c   : > { %4051 = vpow2.f32 %v1397_v0  ;;  %v1399_v4 = vmul.f32 1.442695, %v1390_v2 }
 0x52e   : > { %4053 = vpow2.f32 %v1399_v4 }
 0x52f   : > { %v1379_v8 = vpop.xlane.xlu1 %1378 }
 0x530   : > { %v1393_v10 = vsub.f32 %v1361_v28, %v1379_v8 }
 0x532   : > { %v1373_v13 = vpop.xlane.xlu0 %1372  ;;  %v1405_v17 = vmul.f32 1.442695, %v1393_v10 }
 0x533   : > { %v1391_v15 = vsub.f32 %v1359_v38, %v1373_v13 }
 0x535   : > { %v1401_v18 = vmul.f32 1.442695, %v1391_v15 }
 0x536   : > { %v4585_v21 = vpop.eup %4051  ;;  %v1376_v22 = vpop.xlane.xlu0 %1375 }
 0x537   : > { %4055 = vpow2.f32 %v1401_v18  ;;  %v1392_v23 = vsub.f32 %v1360_v41, %v1376_v22  ;;  %v1413_v16 = vsel %vm872_vm3, %v4585_v21, 0.0 }
 0x538   : > { %v4589_v25 = vpop.eup %4053  ;;  %1414 = vadd.xlane.f32.xlu1 %v1413_v16  ;;  %4057 = vpow2.f32 %v1405_v17 }
 0x539   : > { %v1403_v19 = vmul.f32 1.442695, %v1392_v23  ;;  %v1416_v26 = vsel %vm872_vm3, %v4589_v25, 0.0 }
 0x53a   : > { %v1385_v27 = vpop.xlane.xlu1 %1384  ;;  %1417 = vadd.xlane.f32.xlu0 %v1416_v26  ;;  %v1382_v28 = vpop.xlane.xlu0 %1381 }
 0x53b   : > { %4059 = vpow2.f32 %v1403_v19  ;;  %v1395_v29 = vsub.f32 %v1363_v49, %v1385_v27  ;;  %v1394_v30 = vsub.f32 %v1362_v46, %v1382_v28 }
 0x53d   : > { %v1409_v32 = vmul.f32 1.442695, %v1395_v29  ;;  %v1407_v36 = vmul.f32 1.442695, %v1394_v30 }
 0x53e   : > { %v1458_v37 = vpop.permute.xlu1 %1457  ;;  %v1388_v38 = vpop.xlane.xlu0 %1387 }
 0x53f   : > { %4061 = vpow2.f32 %v1409_v32  ;;  %v1396_v39 = vsub.f32 %v1364_v53, %v1388_v38  ;;  %3746 = vmatpush3.bf16.msra.mxu0 %v1458_v37 }
 0x540   : > { %4063 = vpow2.f32 %v1407_v36  ;;  %3757 = vmatprep.subr.bf16.mxu0 %v4219_v14 }
 0x541   : > { %v4056_v40 = vpop.eup %4055  ;;  %v1411_v41 = vmul.f32 1.442695, %v1396_v39 }
 0x542   : > { %v1505_v42 = vpop.permute.xlu0 %1504  ;;  %v1419_v43 = vsel %vm872_vm3, %v4056_v40, 0.0  ;;  %v4595_v47 = vpop.eup %4057 }
 0x543   : > { %4065 = vpow2.f32 %v1411_v41  ;;  %1420 = vadd.xlane.f32.xlu1 %v1419_v43  ;;  %3752 = vmatpush3.bf16.msra.mxu1 %v1505_v42  ;;  %v1425_v48 = vsel %vm872_vm3, %v4595_v47, 0.0  ;;  %v1552_v57 = vpop.permute.xlu1 %1551 }
 0x544   : > { %3763 = vmatprep.subr.bf16.mxu1 %v4219_v14 }
 0x545   : > { %v4060_v46 = vpop.eup %4059 }
 0x546   : > { %v1422_v49 = vsel %vm872_vm3, %v4060_v46, 0.0 }
 0x547   : > { %1426 = vadd.xlane.f32.xlu1 %v1425_v48  ;;  %1423 = vadd.xlane.f32.xlu0 %v1422_v49  ;;  %v1599_v58 = vpop.permute.xlu1 %1598 }
 0x549   : > { %v4601_v51 = vpop.eup %4061 }
 0x54a   : > { %v4064_v52 = vpop.eup %4063  ;;  %v1431_v53 = vsel %vm872_vm3, %v4601_v51, 0.0 }
 0x54b   : > { %1432 = vadd.xlane.f32.xlu1 %v1431_v53  ;;  %v1428_v54 = vsel %vm872_vm3, %v4064_v52, 0.0 }
 0x54c   : > { %1429 = vadd.xlane.f32.xlu0 %v1428_v54 }
 0x54d   : > { %v4066_v55 = vpop.eup %4065 }
 0x54e   : > { %v1434_v56 = vsel %vm872_vm3, %v4066_v55, 0.0 }
 0x550   : > { %1435 = vadd.xlane.f32.xlu0 %v1434_v56 }
 0x55c   : > { %1698 = vrot.lane.b32.xlu1 %v4365_v31, %s4226_s28 }
 0x560   : > { %1749 = vrot.lane.b32.xlu1 %v4371_v35, %s4226_s28 }
 0x564   : > { %1800 = vrot.lane.b32.xlu1 %v4367_v33, %s4226_s28 }
 0x566   : > { %1647 = vrot.lane.b32.xlu0 %v4369_v34, %s4226_s28 }
 0x568   : > { %1798 = vrot.lane.b32.xlu1 %v4367_v33, %s4227_s17 }
 0x56a   : > { %1645 = vrot.lane.b32.xlu0 %v4369_v34, %s4227_s17 }
 0x56e   : > { %1696 = vrot.lane.b32.xlu0 %v4365_v31, %s4227_s17 }
 0x572   : > { %1747 = vrot.lane.b32.xlu0 %v4371_v35, %s4227_s17  ;;  %s4231_s17 = smov 40  }
 0x5c5   : > { %v1415_v59 = vpop.xlane.xlu1 %1414 }
 0x5c6   : > { %4067 = vrcp.f32 %v1415_v59 }
 0x5c7   : > { %v1418_v61 = vpop.xlane.xlu0 %1417 }
 0x5c8   : > { %4069 = vrcp.f32 %v1418_v61 }
 0x5d0   : > { %v4068_v0 = vpop.eup %4067  ;;  %v1421_v2 = vpop.xlane.xlu1 %1420 }
 0x5d1   : > { %v1445_v8 = vmul.f32 %v4068_v0, %v4585_v21  ;;  %4071 = vrcp.f32 %v1421_v2 }
 0x5d2   : > { %v4070_v4 = vpop.eup %4069 }
 0x5d3   : > { %v1446_v10 = vmul.f32 %v4070_v4, %v4589_v25 }
 0x5d4   : > { %v1427_v13 = vpop.xlane.xlu1 %1426  ;;  %v1424_v15 = vpop.xlane.xlu0 %1423 }
 0x5d5   : > { %v1453_v17 = vpack.c.bf16 %v1446_v10, %v1445_v8  ;;  %4073 = vrcp.f32 %v1424_v15 }
 0x5d6   : > { %4075 = vrcp.f32 %v1427_v13 }
 0x5d7   : > { %3748 = vmatmul.mubr.msk.bf16.vlgmr.msra.gmra.mrb[24].mxu0 %vm872_vm3, %v1453_v17 }
 0x5d8   : > { %3758 = vmatpush3.bf16.msra.mxu0 %v1552_v57  ;;  %3759 = vmatprep.mubr.msk.bf16.mxu0 %vm4220_vm1, %v4219_v14  ;;  %v1433_v18 = vpop.xlane.xlu1 %1432 }
 0x5d9   : > { %v1430_v22 = vpop.xlane.xlu0 %1429  ;;  %3769 = vmatprep.subr.bf16.mxu0 %v4219_v14 }
 0x5da   : > { %4077 = vrcp.f32 %v1430_v22 }
 0x5db   : > { %4079 = vrcp.f32 %v1433_v18  ;;  %v4072_v23 = vpop.eup %4071 }
 0x5dc   : > { %v1447_v25 = vmul.f32 %v4072_v23, %v4056_v40  ;;  %v1699_v37 = vpop.permute.xlu1 %1698 }
 0x5dd   : > { %v1436_v21 = vpop.xlane.xlu0 %1435  ;;  %v1704_v48 = vsel %vm666_vm2, %v1699_v37, 0 }
 0x5de   : > { %4081 = vrcp.f32 %v1436_v21 }
 0x5df   : > { %v4074_v16 = vpop.eup %4073 }
 0x5e0   : > { %v1448_v19 = vmul.f32 %v4074_v16, %v4060_v46  ;;  %v4076_v26 = vpop.eup %4075  ;;  %v1750_v46 = vpop.permute.xlu1 %1749 }
 0x5e1   : > { %v1449_v29 = vmul.f32 %v4076_v26, %v4595_v47  ;;  %v1648_v36 = vpop.permute.xlu0 %1647  ;;  %v1755_v49 = vsel %vm666_vm2, %v1750_v46, 0 }
 0x5e2   : > { %v1454_v27 = vpack.c.bf16 %v1448_v19, %v1447_v25  ;;  %v1653_v42 = vsel %vm666_vm2, %v1648_v36, 0 }
 0x5e4   : > { %v4078_v28 = vpop.eup %4077  ;;  %3754 = vmatmul.mubr.msk.bf16.vlgmr.msra.gmra.mrb[32].mxu1 %vm872_vm3, %v1454_v27 }
 0x5e5   : > { %v1450_v30 = vmul.f32 %v4078_v28, %v4064_v52  ;;  %v4080_v32 = vpop.eup %4079  ;;  %3764 = vmatpush3.bf16.msra.mxu1 %v1599_v58  ;;  %3765 = vmatprep.mubr.msk.bf16.mxu1 %vm4220_vm1, %v4219_v14  ;;  %v1646_v47 = vpop.permute.xlu0 %1645 }
 0x5e6   : > { %3775 = vmatprep.subr.bf16.mxu1 %v4219_v14  ;;  %v1451_v40 = vmul.f32 %v4080_v32, %v4601_v51  ;;  %v1801_v52 = vpop.permute.xlu1 %1800 }
 0x5e7   : > { %v1455_v38 = vpack.c.bf16 %v1450_v30, %v1449_v29  ;;  %v1806_v53 = vsel %vm666_vm2, %v1801_v52, 0 }
 0x5e8   : > { %v4082_v39 = vpop.eup %4081 }
 0x5e9   : > { %v1452_v41 = vmul.f32 %v4082_v39, %v4066_v55  ;;  %3760 = vmatmul.mubr.msk.bf16.vlgmr.msra.gmra.mrb[28].mxu0 %vm872_vm3, %v1455_v38  ;;  %v1697_v51 = vpop.permute.xlu0 %1696 }
 0x5ea   : > { %3770 = vmatpush3.bf16.xpose.msra.mxu0 %v1653_v42  ;;  %3771 = vmatprep.mubr.msk.bf16.mxu0 %vm4220_vm1, %v4219_v14  ;;  %v1799_v55 = vpop.permute.xlu1 %1798 }
 0x5eb   : > { %v1456_v43 = vpack.c.bf16 %v1452_v41, %v1451_v40  ;;  %3781 = vmatprep.subr.bf16.mxu0 %v4219_v14 }
 0x5ed   : > { %3766 = vmatmul.mubr.msk.bf16.vlgmr.msra.gmra.mrb[36].mxu1 %vm872_vm3, %v1456_v43  ;;  %v1748_v54 = vpop.permute.xlu0 %1747 }
 0x5ee   : > { %3777 = vmatprep.mubr.msk.bf16.mxu1 %vm4220_vm1, %v4219_v14  ;;  %3776 = vmatpush3.bf16.xpose.msra.mxu1 %v1704_v48 }
 0x5ef   : > { %3787 = vmatprep.subr.bf16.mxu1 %v4219_v14 }
 0x5f1   : > { %3772 = vmatmul.mubr.msk.bf16.vlgmr.msra.gmra.mrb[32].mxu0 %vm666_vm2, %v1646_v47 }
 0x5f2   : > { %3782 = vmatpush3.bf16.xpose.msra.mxu0 %v1755_v49  ;;  %3783 = vmatprep.mubr.msk.bf16.mxu0 %vm4220_vm1, %v4219_v14 }
 0x5f3   : > { %3793 = vmatprep.subr.bf16.mxu0 %v4219_v14 }
 0x5f5   : > { %3778 = vmatmul.mubr.msk.bf16.vlgmr.msra.gmra.mrb[40].mxu1 %vm666_vm2, %v1697_v51 }
 0x5f6   : > { %3788 = vmatpush3.bf16.xpose.msra.mxu1 %v1806_v53  ;;  %3789 = vmatprep.mubr.msk.bf16.mxu1 %vm4220_vm1, %v4219_v14 }
 0x5f7   : > { %3799 = vmatprep.subr.bf16.mxu1 %v4219_v14 }
 0x5f9   : > { %3784 = vmatmul.mubr.msk.bf16.vlgmr.msra.gmra.mrb[36].mxu0 %vm666_vm2, %v1748_v54 }
 0x5fa   : > { %3795 = vmatprep.mubr.msk.bf16.mxu0 %vm4220_vm1, %v4219_v14 }
 0x5fd   : > { %3790 = vmatmul.mubr.msk.bf16.vlgmr.msra.gmra.mrb[44].mxu1 %vm666_vm2, %v1799_v55 }
 0x5fe   : > { %3801 = vmatprep.mubr.msk.bf16.mxu1 %vm4220_vm1, %v4219_v14 }
 0x6aa   : > { %v4653_v56 = vpop.f32.mrb[24].mxu0 }
 0x6ab   : > { %v3749_v57 = vpop.f32.mrb[25].mxu0 }
 0x6ac   : > { %v4655_v58 = vpop.f32.mrb[26].mxu0 }
 0x6ad   : > { %v3949_v59 = vpack.i.bf16 %v4655_v58, %v4653_v56  ;;  %v3750_v61 = vpop.f32.mrb[27].mxu0 }
 0x6b7   : > { %v4659_v0 = vpop.f32.mrb[32].mxu1 }
 0x6b8   : > { %v3755_v2 = vpop.f32.mrb[33].mxu1 }
 0x6b9   : > { %v4661_v4 = vpop.f32.mrb[34].mxu1 }
 0x6ba   : > { %v3954_v8 = vpack.i.bf16 %v4661_v4, %v4659_v0  ;;  %v3756_v10 = vpop.f32.mrb[35].mxu1 }
 0x6bc   : > { %v4665_v13 = vpop.f32.mrb[28].mxu0 }
 0x6bd   : > { %v3761_v15 = vpop.f32.mrb[29].mxu0 }
 0x6be   : > { %v4667_v17 = vpop.f32.mrb[30].mxu0 }
 0x6bf   : > { %v3969_v18 = vpack.i.bf16 %v4667_v17, %v4665_v13  ;;  %v3762_v22 = vpop.f32.mrb[31].mxu0 }
 0x6c0   : > { %v4671_v21 = vpop.f32.mrb[36].mxu1 }
 0x6c1   : > { %v3767_v23 = vpop.f32.mrb[37].mxu1 }
 0x6c2   : > { %v4673_v16 = vpop.f32.mrb[38].mxu1 }
 0x6c3   : > { %v3974_v25 = vpack.i.bf16 %v4673_v16, %v4671_v21  ;;  %v3768_v19 = vpop.f32.mrb[39].mxu1 }
 0x6c4   : > { %v1689_v26 = vpop.f32.mrb[32].mxu0 }
 0x6c5   : > { %v1849_v27 = vadd.f32 %v1689_v26, %v4404_v44  ;;  %v3773_v28 = vpop.f32.mrb[33].mxu0 }
 0x6c6   : > { %v1692_v29 = vpop.f32.mrb[34].mxu0 }
 0x6c7   : > { %v1850_v30 = vadd.f32 %v1692_v29, %v4415_v50  ;;  %v3774_v32 = vpop.f32.mrb[35].mxu0  ;;  %v1857_v36 = vsel %vm872_vm3, %v1849_v27, -inf }
 0x6c8   : > { %1858 = vmax.xlane.f32.xlu0 %v1857_v36  ;;  %v1740_v37 = vpop.f32.mrb[40].mxu1 }
 0x6c9   : > { %v1860_v38 = vsel %vm872_vm3, %v1850_v30, -inf  ;;  %v1851_v39 = vadd.f32 %v1740_v37, %v4424_v60  ;;  %v3779_v40 = vpop.f32.mrb[41].mxu1 }
 0x6ca   : > { %1861 = vmax.xlane.f32.xlu1 %v1860_v38  ;;  %v1743_v41 = vpop.f32.mrb[42].mxu1 }
 0x6cb   : > { %v1852_v42 = vadd.f32 %v1743_v41, %v4430_v63  ;;  %v3780_v43 = vpop.f32.mrb[43].mxu1  ;;  %v1863_v44 = vsel %vm872_vm3, %v1851_v39, -inf }
 0x6cc   : > { %v1791_v47 = vpop.f32.mrb[36].mxu0  ;;  %1864 = vmax.xlane.f32.xlu0 %v1863_v44 }
 0x6cd   : > { %v1853_v50 = vadd.f32 %v1791_v47, %v4409_v45  ;;  %v3785_v46 = vpop.f32.mrb[37].mxu0  ;;  %v1866_v60 = vsel %vm872_vm3, %v1852_v42, -inf }
 0x6ce   : > { %v1794_v48 = vpop.f32.mrb[38].mxu0 }
 0x6cf   : > { %v3786_v49 = vpop.f32.mrb[39].mxu0  ;;  %v1869_v51 = vsel %vm872_vm3, %v1853_v50, -inf  ;;  %v1854_v52 = vadd.f32 %v1794_v48, %v4438_v6 }
 0x6d0   : > { %1870 = vmax.xlane.f32.xlu1 %v1869_v51  ;;  %1867 = vmax.xlane.f32.xlu0 %v1866_v60  ;;  %v1842_v53 = vpop.f32.mrb[44].mxu1 }
 0x6d1   : > { %v1855_v63 = vadd.f32 %v1842_v53, %v4443_v7  ;;  %v3791_v54 = vpop.f32.mrb[45].mxu1  ;;  %v1872_v2 = vsel %vm872_vm3, %v1854_v52, -inf }
 0x6d2   : > { %v1845_v55 = vpop.f32.mrb[46].mxu1 }
 0x6d3   : > { %v1856_v57 = vadd.f32 %v1845_v55, %v4450_v11  ;;  %v3792_v61 = vpop.f32.mrb[47].mxu1  ;;  %v1875_v45 = vsel %vm872_vm3, %v1855_v63, -inf }
 0x6d4   : > { %1876 = vmax.xlane.f32.xlu1 %v1875_v45  ;;  %1873 = vmax.xlane.f32.xlu0 %v1872_v2 }
 0x6d5   : > { %v1878_v6 = vsel %vm872_vm3, %v1856_v57, -inf }
 0x6d8   : > { %1879 = vmax.xlane.f32.xlu0 %v1878_v6 }
 0x6e5   : > { %1949 = vrot.lane.b32.xlu1 %v4369_v34, %s4228_s18 }
 0x6e9   : > { %2043 = vrot.lane.b32.xlu1 %v4371_v35, %s4228_s18 }
 0x6ed   : > { %2090 = vrot.lane.b32.xlu1 %v4367_v33, %s4228_s18 }
 0x6ee   : > { %1996 = vrot.lane.b32.xlu0 %v4365_v31, %s4228_s18  ;;  %s4232_s18 = smov 8  }
 0x755   : > { %v1859_v7 = vpop.xlane.xlu0 %1858 }
 0x756   : > { %v1881_v11 = vsub.f32 %v1849_v27, %v1859_v7 }
 0x757   : > { %v1862_v10 = vpop.xlane.xlu1 %1861 }
 0x758   : > { %v1889_v15 = vmul.f32 1.442695, %v1881_v11  ;;  %v1882_v22 = vsub.f32 %v1850_v30, %v1862_v10 }
 0x759   : > { %v1865_v19 = vpop.xlane.xlu0 %1864 }
 0x75a   : > { %4083 = vpow2.f32 %v1889_v15  ;;  %v1891_v23 = vmul.f32 1.442695, %v1882_v22  ;;  %v1883_v26 = vsub.f32 %v1851_v39, %v1865_v19 }
 0x75c   : > { %4085 = vpow2.f32 %v1891_v23  ;;  %v1893_v28 = vmul.f32 1.442695, %v1883_v26 }
 0x75d   : > { %v1871_v29 = vpop.xlane.xlu1 %1870  ;;  %v1868_v36 = vpop.xlane.xlu0 %1867 }
 0x75e   : > { %v1885_v32 = vsub.f32 %v1853_v50, %v1871_v29  ;;  %4087 = vpow2.f32 %v1893_v28  ;;  %v1884_v37 = vsub.f32 %v1852_v42, %v1868_v36 }
 0x760   : > { %v1897_v38 = vmul.f32 1.442695, %v1885_v32  ;;  %v1895_v40 = vmul.f32 1.442695, %v1884_v37 }
 0x761   : > { %v1877_v41 = vpop.xlane.xlu1 %1876  ;;  %v1874_v43 = vpop.xlane.xlu0 %1873 }
 0x762   : > { %4089 = vpow2.f32 %v1897_v38  ;;  %v1887_v27 = vsub.f32 %v1855_v63, %v1877_v41  ;;  %v1886_v44 = vsub.f32 %v1854_v52, %v1874_v43 }
 0x763   : > { %4091 = vpow2.f32 %v1895_v40 }
 0x764   : > { %v4084_v30 = vpop.eup %4083  ;;  %v1901_v47 = vmul.f32 1.442695, %v1887_v27  ;;  %v1899_v46 = vmul.f32 1.442695, %v1886_v44 }
 0x765   : > { %v1905_v39 = vsel %vm872_vm3, %v4084_v30, 0.0  ;;  %v1950_v49 = vpop.permute.xlu1 %1949  ;;  %v1880_v51 = vpop.xlane.xlu0 %1879 }
 0x766   : > { %v4086_v48 = vpop.eup %4085  ;;  %1906 = vadd.xlane.f32.xlu1 %v1905_v39  ;;  %4093 = vpow2.f32 %v1901_v47  ;;  %v1888_v50 = vsub.f32 %v1856_v57, %v1880_v51  ;;  %3794 = vmatpush3.bf16.msra.mxu0 %v1950_v49 }
 0x767   : > { %v1908_v42 = vsel %vm872_vm3, %v4086_v48, 0.0  ;;  %4095 = vpow2.f32 %v1899_v46  ;;  %3805 = vmatprep.subr.bf16.mxu0 %v4219_v14 }
 0x768   : > { %1909 = vadd.xlane.f32.xlu0 %v1908_v42  ;;  %v4088_v60 = vpop.eup %4087  ;;  %v1903_v52 = vmul.f32 1.442695, %v1888_v50 }
 0x769   : > { %v1997_v53 = vpop.permute.xlu0 %1996  ;;  %v1911_v63 = vsel %vm872_vm3, %v4088_v60, 0.0  ;;  %v2044_v15 = vpop.permute.xlu1 %2043 }
 0x76a   : > { %4097 = vpow2.f32 %v1903_v52  ;;  %1912 = vadd.xlane.f32.xlu1 %v1911_v63  ;;  %3800 = vmatpush3.bf16.msra.mxu1 %v1997_v53 }
 0x76b   : > { %3811 = vmatprep.subr.bf16.mxu1 %v4219_v14 }
 0x76c   : > { %v4090_v54 = vpop.eup %4089 }
 0x76d   : > { %v4092_v55 = vpop.eup %4091  ;;  %v1917_v57 = vsel %vm872_vm3, %v4090_v54, 0.0  ;;  %v2091_v22 = vpop.permute.xlu1 %2090 }
 0x76e   : > { %v1914_v61 = vsel %vm872_vm3, %v4092_v55, 0.0  ;;  %1918 = vadd.xlane.f32.xlu1 %v1917_v57 }
 0x76f   : > { %1915 = vadd.xlane.f32.xlu0 %v1914_v61 }
 0x770   : > { %v4704_v45 = vpop.eup %4093 }
 0x771   : > { %v4096_v2 = vpop.eup %4095  ;;  %v1923_v6 = vsel %vm872_vm3, %v4704_v45, 0.0 }
 0x772   : > { %1924 = vadd.xlane.f32.xlu1 %v1923_v6  ;;  %v1920_v7 = vsel %vm872_vm3, %v4096_v2, 0.0 }
 0x773   : > { %1921 = vadd.xlane.f32.xlu0 %v1920_v7 }
 0x774   : > { %v4098_v11 = vpop.eup %4097 }
 0x775   : > { %v1926_v10 = vsel %vm872_vm3, %v4098_v11, 0.0 }
 0x777   : > { %1927 = vadd.xlane.f32.xlu0 %v1926_v10 }
 0x783   : > { %2190 = vrot.lane.b32.xlu1 %v4365_v31, %s4229_s19 }
 0x787   : > { %2241 = vrot.lane.b32.xlu1 %v4371_v35, %s4229_s19 }
 0x78b   : > { %2292 = vrot.lane.b32.xlu1 %v4367_v33, %s4229_s19 }
 0x78d   : > { %2139 = vrot.lane.b32.xlu0 %v4369_v34, %s4229_s19  ;;  %s4233_s19 = smov 16  }
 0x78f   : > { %2290 = vrot.lane.b32.xlu1 %v4367_v33, %s4230_s20 }
 0x791   : > { %2137 = vrot.lane.b32.xlu0 %v4369_v34, %s4230_s20 }
 0x795   : > { %2188 = vrot.lane.b32.xlu0 %v4365_v31, %s4230_s20 }
 0x799   : > { %2239 = vrot.lane.b32.xlu0 %v4371_v35, %s4230_s20  ;;  %s5107_s20 = scalar_lea.vmem %s5154_s14, %s3569_s21 }
 0x7f3   : > { %v1907_v23 = vpop.xlane.xlu1 %1906 }
 0x7f4   : > { %4099 = vrcp.f32 %v1907_v23 }
 0x7f5   : > { %v1910_v19 = vpop.xlane.xlu0 %1909 }
 0x7f6   : > { %4101 = vrcp.f32 %v1910_v19 }
 0x7f7   : > { %v1913_v26 = vpop.xlane.xlu1 %1912 }
 0x7f8   : > { %4103 = vrcp.f32 %v1913_v26 }
 0x7fb   : > { %v1919_v28 = vpop.xlane.xlu1 %1918 }
 0x7fc   : > { %v1916_v29 = vpop.xlane.xlu0 %1915 }
 0x7fd   : > { %4105 = vrcp.f32 %v1916_v29 }
 0x7fe   : > { %v4100_v32 = vpop.eup %4099  ;;  %4107 = vrcp.f32 %v1919_v28 }
 0x7ff   : > { %v1937_v37 = vmul.f32 %v4100_v32, %v4084_v30  ;;  %v1925_v40 = vpop.xlane.xlu1 %1924 }
 0x800   : > { %v4102_v36 = vpop.eup %4101  ;;  %v1922_v41 = vpop.xlane.xlu0 %1921 }
 0x801   : > { %v1938_v38 = vmul.f32 %v4102_v36, %v4086_v48  ;;  %4109 = vrcp.f32 %v1922_v41 }
 0x802   : > { %4111 = vrcp.f32 %v1925_v40  ;;  %v4104_v44 = vpop.eup %4103 }
 0x803   : > { %v1945_v43 = vpack.c.bf16 %v1938_v38, %v1937_v37  ;;  %v1939_v46 = vmul.f32 %v4104_v44, %v4088_v60  ;;  %v2191_v53 = vpop.permute.xlu1 %2190 }
 0x804   : > { %v1928_v27 = vpop.xlane.xlu0 %1927  ;;  %v2196_v7 = vsel %vm666_vm2, %v2191_v53, 0 }
 0x805   : > { %3796 = vmatmul.mubr.msk.bf16.vlgmr.msra.gmra.mrb[40].mxu0 %vm872_vm3, %v1945_v43  ;;  %4113 = vrcp.f32 %v1928_v27 }
 0x806   : > { %3806 = vmatpush3.bf16.msra.mxu0 %v2044_v15  ;;  %3807 = vmatprep.mubr.msk.bf16.mxu0 %vm4220_vm1, %v4219_v14 }
 0x807   : > { %3817 = vmatprep.subr.bf16.mxu0 %v4219_v14  ;;  %v4106_v47 = vpop.eup %4105  ;;  %v2242_v6 = vpop.permute.xlu1 %2241 }
 0x808   : > { %v1940_v30 = vmul.f32 %v4106_v47, %v4092_v55  ;;  %v4108_v39 = vpop.eup %4107  ;;  %v2140_v52 = vpop.permute.xlu0 %2139 }
 0x809   : > { %v1941_v51 = vmul.f32 %v4108_v39, %v4090_v54  ;;  %v2145_v61 = vsel %vm666_vm2, %v2140_v52, 0 }
 0x80a   : > { %v1946_v48 = vpack.c.bf16 %v1940_v30, %v1939_v46 }
 0x80b   : > { %v4110_v49 = vpop.eup %4109  ;;  %v2293_v10 = vpop.permute.xlu1 %2292 }
 0x80c   : > { %v1942_v50 = vmul.f32 %v4110_v49, %v4096_v2  ;;  %3802 = vmatmul.mubr.msk.bf16.vlgmr.msra.gmra.mrb[48].mxu1 %vm872_vm3, %v1946_v48  ;;  %v4112_v42 = vpop.eup %4111  ;;  %v2138_v2 = vpop.permute.xlu0 %2137  ;;  %v2298_v15 = vsel %vm666_vm2, %v2293_v10, 0  ;;  %v4182_v10 = vld [vmem:[%s5141_s1 + $0x18] sm:$0xff] }
 0x80d   : > { %3812 = vmatpush3.bf16.msra.mxu1 %v2091_v22  ;;  %3813 = vmatprep.mubr.msk.bf16.mxu1 %vm4220_vm1, %v4219_v14  ;;  %v1943_v60 = vmul.f32 %v4112_v42, %v4704_v45  ;;  %v2247_v45 = vsel %vm666_vm2, %v2242_v6, 0  ;;  %v4179_v42 = vld [vmem:[%s5141_s1] sm:$0xff]  ;;  %v4181_v6 = vld [vmem:[%s5141_s1 + $0x10] sm:$0xff] }
 0x80e   : > { %v1947_v63 = vpack.c.bf16 %v1942_v50, %v1941_v51  ;;  %3823 = vmatprep.subr.bf16.mxu1 %v4219_v14 }
 0x80f   : > { %v4114_v57 = vpop.eup %4113  ;;  %v2291_v23 = vpop.permute.xlu1 %2290 }
 0x810   : > { %v1944_v55 = vmul.f32 %v4114_v57, %v4098_v11  ;;  %3808 = vmatmul.mubr.msk.bf16.vlgmr.msra.gmra.mrb[44].mxu0 %vm872_vm3, %v1947_v63  ;;  %v2189_v11 = vpop.permute.xlu0 %2188  ;;  %v4180_v57 = vld [vmem:[%s5141_s1 + $0x8] sm:$0xff] }
 0x811   : > { %3818 = vmatpush3.bf16.xpose.msra.mxu0 %v2145_v61  ;;  %3819 = vmatprep.mubr.msk.bf16.mxu0 %vm4220_vm1, %v4219_v14 }
 0x812   : > { %v1948_v54 = vpack.c.bf16 %v1944_v55, %v1943_v60  ;;  %3829 = vmatprep.subr.bf16.mxu0 %v4219_v14 }
 0x814   : > { %3814 = vmatmul.mubr.msk.bf16.vlgmr.msra.gmra.mrb[52].mxu1 %vm872_vm3, %v1948_v54  ;;  %v2240_v22 = vpop.permute.xlu0 %2239 }
 0x815   : > { %3825 = vmatprep.mubr.msk.bf16.mxu1 %vm4220_vm1, %v4219_v14 }
 0x816   : > { %3824 = vmatpush3.bf16.xpose.msra.mxu1 %v2196_v7 }
 0x817   : > { %3835 = vmatprep.subr.bf16.mxu1 %v4219_v14 }
 0x818   : > { %3820 = vmatmul.mubr.msk.bf16.vlgmr.msra.gmra.mrb[48].mxu0 %vm666_vm2, %v2138_v2 }
 0x819   : > { %3830 = vmatpush3.bf16.xpose.msra.mxu0 %v2247_v45  ;;  %3831 = vmatprep.mubr.msk.bf16.mxu0 %vm4220_vm1, %v4219_v14 }
 0x81a   : > { %3841 = vmatprep.subr.bf16.mxu0 %v4219_v14 }
 0x81d   : > { %3826 = vmatmul.mubr.msk.bf16.vlgmr.msra.gmra.mrb[56].mxu1 %vm666_vm2, %v2189_v11 }
 0x81e   : > { %3836 = vmatpush3.bf16.xpose.msra.mxu1 %v2298_v15  ;;  %3837 = vmatprep.mubr.msk.bf16.mxu1 %vm4220_vm1, %v4219_v14 }
 0x81f   : > { %3847 = vmatprep.subr.bf16.mxu1 %v4219_v14 }
 0x820   : > { %3832 = vmatmul.mubr.msk.bf16.vlgmr.msra.gmra.mrb[52].mxu0 %vm666_vm2, %v2240_v22 }
 0x821   : > { %3843 = vmatprep.mubr.msk.bf16.mxu0 %vm4220_vm1, %v4219_v14 }
 0x825   : > { %3838 = vmatmul.mubr.msk.bf16.vlgmr.msra.gmra.mrb[60].mxu1 %vm666_vm2, %v2291_v23 }
 0x826   : > { %3849 = vmatprep.mubr.msk.bf16.mxu1 %vm4220_vm1, %v4219_v14 }
 0x8d8   : > { %v4753_v19 = vpop.f32.mrb[40].mxu0 }
 0x8d9   : > { %v3797_v26 = vpop.f32.mrb[41].mxu0 }
 0x8da   : > { %v4755_v28 = vpop.f32.mrb[42].mxu0 }
 0x8db   : > { %v3959_v29 = vpack.i.bf16 %v4755_v28, %v4753_v19  ;;  %v3798_v32 = vpop.f32.mrb[43].mxu0 }
 0x8dc   : > { %v4183_v32 = vld [vmem:[%s5141_s1 + $0x20] sm:$0xff] }
 0x8df   : > { %v4759_v36 = vpop.f32.mrb[48].mxu1 }
 0x8e0   : > { %v3803_v37 = vpop.f32.mrb[49].mxu1 }
 0x8e1   : > { %v4761_v38 = vpop.f32.mrb[50].mxu1 }
 0x8e2   : > { %v3964_v40 = vpack.i.bf16 %v4761_v38, %v4759_v36  ;;  %v3804_v41 = vpop.f32.mrb[51].mxu1 }
 0x8e3   : > { %v4765_v43 = vpop.f32.mrb[44].mxu0 }
 0x8e4   : > { %v3809_v27 = vpop.f32.mrb[45].mxu0 }
 0x8e5   : > { %v4767_v44 = vpop.f32.mrb[46].mxu0 }
 0x8e6   : > { %v3984_v47 = vpack.i.bf16 %v4767_v44, %v4765_v43  ;;  %v3810_v46 = vpop.f32.mrb[47].mxu0 }
 0x8e7   : > { %v4771_v30 = vpop.f32.mrb[52].mxu1 }
 0x8e8   : > { %v3815_v39 = vpop.f32.mrb[53].mxu1 }
 0x8e9   : > { %v4773_v48 = vpop.f32.mrb[54].mxu1 }
 0x8ea   : > { %v3994_v49 = vpack.i.bf16 %v4773_v48, %v4771_v30  ;;  %v3816_v51 = vpop.f32.mrb[55].mxu1 }
 0x8eb   : > { %v2181_v50 = vpop.f32.mrb[48].mxu0  ;;  %v4184_v51 = vld [vmem:[%s5141_s1 + $0x28] sm:$0xff] }
 0x8ec   : > { %v2341_v52 = vadd.f32 %v4179_v42, %v2181_v50  ;;  %v3821_v53 = vpop.f32.mrb[49].mxu0 }
 0x8ed   : > { %v2184_v63 = vpop.f32.mrb[50].mxu0 }
 0x8ee   : > { %v2342_v60 = vadd.f32 %v4180_v57, %v2184_v63  ;;  %v3822_v55 = vpop.f32.mrb[51].mxu0  ;;  %v2349_v61 = vsel %vm872_vm3, %v2341_v52, -inf  ;;  %v4185_v63 = vld [vmem:[%s5141_s1 + $0x30] sm:$0xff] }
 0x8ef   : > { %2350 = vmax.xlane.f32.xlu0 %v2349_v61 }
 0x8f0   : > { %v2232_v54 = vpop.f32.mrb[56].mxu1  ;;  %v2352_v2 = vsel %vm872_vm3, %v2342_v60, -inf }
 0x8f1   : > { %v2343_v7 = vadd.f32 %v4181_v6, %v2232_v54  ;;  %v3827_v45 = vpop.f32.mrb[57].mxu1  ;;  %2353 = vmax.xlane.f32.xlu1 %v2352_v2  ;;  %v4186_v54 = vld [vmem:[%s5141_s1 + $0x38] sm:$0xff] }
 0x8f2   : > { %v2235_v11 = vpop.f32.mrb[58].mxu1 }
 0x8f3   : > { %v2344_v15 = vadd.f32 %v4182_v10, %v2235_v11  ;;  %v3828_v22 = vpop.f32.mrb[59].mxu1  ;;  %v2355_v23 = vsel %vm872_vm3, %v2343_v7, -inf  ;;  %v2283_v26 = vpop.f32.mrb[52].mxu0 }
 0x8f4   : > { %2356 = vmax.xlane.f32.xlu0 %v2355_v23  ;;  %v2345_v37 = vadd.f32 %v4183_v32, %v2283_v26  ;;  %v3833_v41 = vpop.f32.mrb[53].mxu0 }
 0x8f5   : > { %v2286_v27 = vpop.f32.mrb[54].mxu0  ;;  %v2358_v42 = vsel %vm872_vm3, %v2344_v15, -inf }
 0x8f6   : > { %v3834_v46 = vpop.f32.mrb[55].mxu0  ;;  %v2361_v39 = vsel %vm872_vm3, %v2345_v37, -inf  ;;  %v2346_v50 = vadd.f32 %v4184_v51, %v2286_v27 }
 0x8f7   : > { %2362 = vmax.xlane.f32.xlu1 %v2361_v39 }
 0x8f8   : > { %2359 = vmax.xlane.f32.xlu0 %v2358_v42  ;;  %v2334_v53 = vpop.f32.mrb[60].mxu1  ;;  %v2364_v11 = vsel %vm872_vm3, %v2346_v50, -inf }
 0x8f9   : > { %v2347_v57 = vadd.f32 %v4185_v63, %v2334_v53  ;;  %v3839_v55 = vpop.f32.mrb[61].mxu1 }
 0x8fa   : > { %v2337_v61 = vpop.f32.mrb[62].mxu1 }
 0x8fb   : > { %v2348_v2 = vadd.f32 %v4186_v54, %v2337_v61  ;;  %v3840_v6 = vpop.f32.mrb[63].mxu1  ;;  %v2367_v45 = vsel %vm872_vm3, %v2347_v57, -inf }
 0x8fc   : > { %2368 = vmax.xlane.f32.xlu1 %v2367_v45  ;;  %2365 = vmax.xlane.f32.xlu0 %v2364_v11 }
 0x8fd   : > { %v2370_v10 = vsel %vm872_vm3, %v2348_v2, -inf }
 0x900   : > { %2371 = vmax.xlane.f32.xlu0 %v2370_v10 }
 0x90d   : > { %2441 = vrot.lane.b32.xlu1 %v4369_v34, %s4231_s17 }
 0x97c   : > { %v2351_v22 = vpop.xlane.xlu0 %2350 }
 0x97d   : > { %v2373_v23 = vsub.f32 %v2341_v52, %v2351_v22 }
 0x97e   : > { %v2354_v26 = vpop.xlane.xlu1 %2353 }
 0x97f   : > { %v2381_v32 = vmul.f32 1.442695, %v2373_v23  ;;  %v2374_v41 = vsub.f32 %v2342_v60, %v2354_v26 }
 0x981   : > { %4115 = vpow2.f32 %v2381_v32  ;;  %v2383_v27 = vmul.f32 1.442695, %v2374_v41  ;;  %v2357_v46 = vpop.xlane.xlu0 %2356 }
 0x982   : > { %v2375_v39 = vsub.f32 %v2343_v7, %v2357_v46 }
 0x983   : > { %4117 = vpow2.f32 %v2383_v27 }
 0x984   : > { %v2385_v51 = vmul.f32 1.442695, %v2375_v39  ;;  %v2363_v42 = vpop.xlane.xlu1 %2362 }
 0x985   : > { %v2377_v53 = vsub.f32 %v2345_v37, %v2363_v42  ;;  %v2360_v63 = vpop.xlane.xlu0 %2359 }
 0x986   : > { %4119 = vpow2.f32 %v2385_v51  ;;  %v2376_v55 = vsub.f32 %v2344_v15, %v2360_v63 }
 0x987   : > { %v2389_v61 = vmul.f32 1.442695, %v2377_v53 }
 0x988   : > { %v2387_v54 = vmul.f32 1.442695, %v2376_v55 }
 0x989   : > { %4121 = vpow2.f32 %v2389_v61  ;;  %v2369_v34 = vpop.xlane.xlu1 %2368  ;;  %v2366_v6 = vpop.xlane.xlu0 %2365 }
 0x98a   : > { %4123 = vpow2.f32 %v2387_v54  ;;  %v2379_v52 = vsub.f32 %v2347_v57, %v2369_v34  ;;  %v2378_v45 = vsub.f32 %v2346_v50, %v2366_v6 }
 0x98b   : > { %v4116_v60 = vpop.eup %4115 }
 0x98c   : > { %v2393_v11 = vmul.f32 1.442695, %v2379_v52  ;;  %v2391_v10 = vmul.f32 1.442695, %v2378_v45  ;;  %v2397_v7 = vsel %vm872_vm3, %v4116_v60, 0.0 }
 0x98d   : > { %v4118_v22 = vpop.eup %4117  ;;  %v2442_v23 = vpop.permute.xlu1 %2441  ;;  %2398 = vadd.xlane.f32.xlu1 %v2397_v7 }
 0x98e   : > { %v2372_v26 = vpop.xlane.xlu0 %2371  ;;  %4125 = vpow2.f32 %v2393_v11  ;;  %3842 = vmatpush3.bf16.msra.mxu0 %v2442_v23  ;;  %v2400_v15 = vsel %vm872_vm3, %v4118_v22, 0.0 }
 0x98f   : > { %v2380_v37 = vsub.f32 %v2348_v2, %v2372_v26  ;;  %4127 = vpow2.f32 %v2391_v10  ;;  %2401 = vadd.xlane.f32.xlu0 %v2400_v15  ;;  %3853 = vmatprep.subr.bf16.mxu0 %v4219_v14 }
 0x990   : > { %v4120_v57 = vpop.eup %4119 }
 0x991   : > { %v2395_v50 = vmul.f32 1.442695, %v2380_v37  ;;  %v2403_v32 = vsel %vm872_vm3, %v4120_v57, 0.0 }
 0x992   : > { %2404 = vadd.xlane.f32.xlu1 %v2403_v32 }
 0x993   : > { %4129 = vpow2.f32 %v2395_v50  ;;  %v4122_v41 = vpop.eup %4121 }
 0x994   : > { %v4124_v27 = vpop.eup %4123  ;;  %v2409_v46 = vsel %vm872_vm3, %v4122_v41, 0.0 }
 0x995   : > { %v2406_v39 = vsel %vm872_vm3, %v4124_v27, 0.0 }
 0x996   : > { %2410 = vadd.xlane.f32.xlu1 %v2409_v46  ;;  %2407 = vadd.xlane.f32.xlu0 %v2406_v39 }
 0x998   : > { %v4817_v2 = vpop.eup %4125 }
 0x999   : > { %v4128_v51 = vpop.eup %4127  ;;  %v2415_v42 = vsel %vm872_vm3, %v4817_v2, 0.0 }
 0x99a   : > { %2416 = vadd.xlane.f32.xlu1 %v2415_v42  ;;  %v2412_v53 = vsel %vm872_vm3, %v4128_v51, 0.0 }
 0x99b   : > { %2413 = vadd.xlane.f32.xlu0 %v2412_v53 }
 0x99d   : > { %v4130_v63 = vpop.eup %4129 }
 0x99e   : > { %v2418_v55 = vsel %vm872_vm3, %v4130_v63, 0.0 }
 0x99f   : > { %2419 = vadd.xlane.f32.xlu0 %v2418_v55 }
 0x9ab   : > { %2535 = vrot.lane.b32.xlu1 %v4371_v35, %s4231_s17 }
 0x9af   : > { %2582 = vrot.lane.b32.xlu1 %v4367_v33, %s4231_s17 }
 0x9b3   : > { %3955 = vrot.lane.b32.xlu1 %v3954_v8, %s4232_s18 }
 0x9b5   : > { %2488 = vrot.lane.b32.xlu0 %v4365_v31, %s4231_s17 }
 0x9b7   : > { %3965 = vrot.lane.b32.xlu1 %v3964_v40, %s4233_s19 }
 0x9b9   : > { %3950 = vrot.lane.b32.xlu0 %v3949_v59, %s4232_s18 }
 0x9bb   : > { %3975 = vrot.lane.b32.xlu1 %v3974_v25, %s4232_s18 }
 0x9bd   : > { %3960 = vrot.lane.b32.xlu0 %v3959_v29, %s4233_s19 }
 0x9c1   : > { %3970 = vrot.lane.b32.xlu0 %v3969_v18, %s4232_s18 }
 0xa1a   : > { %v2399_v31 = vpop.xlane.xlu1 %2398 }
 0xa1b   : > { %4131 = vrcp.f32 %v2399_v31 }
 0xa1c   : > { %v2402_v33 = vpop.xlane.xlu0 %2401 }
 0xa1d   : > { %4133 = vrcp.f32 %v2402_v33 }
 0xa1f   : > { %v2405_v35 = vpop.xlane.xlu1 %2404 }
 0xa20   : > { %4135 = vrcp.f32 %v2405_v35 }
 0xa23   : > { %v2411_v56 = vpop.xlane.xlu1 %2410  ;;  %v2408_v58 = vpop.xlane.xlu0 %2407 }
 0xa24   : > { %4137 = vrcp.f32 %v2408_v58 }
 0xa25   : > { %v4132_v59 = vpop.eup %4131  ;;  %4139 = vrcp.f32 %v2411_v56 }
 0xa26   : > { %v2429_v8 = vmul.f32 %v4132_v59, %v4116_v60 }
 0xa27   : > { %v4134_v0 = vpop.eup %4133  ;;  %v2417_v4 = vpop.xlane.xlu1 %2416 }
 0xa28   : > { %v2430_v21 = vmul.f32 %v4134_v0, %v4118_v22  ;;  %v2414_v16 = vpop.xlane.xlu0 %2413  ;;  %v4011_v22 = vld [vmem:[%s5144_s4] sm:$0xff]  }
 0xa29   : > { %4141 = vrcp.f32 %v2414_v16 }
 0xa2a   : > { %v2437_v25 = vpack.c.bf16 %v2430_v21, %v2429_v8  ;;  %4143 = vrcp.f32 %v2417_v4  ;;  %v4136_v18 = vpop.eup %4135 }
 0xa2b   : > { %v2536_v13 = vpop.permute.xlu1 %2535  ;;  %v2431_v28 = vmul.f32 %v4136_v18, %v4120_v57 }
 0xa2c   : > { %v2420_v17 = vpop.xlane.xlu0 %2419  ;;  %3844 = vmatmul.mubr.msk.bf16.vlgmr.msra.gmra.mrb[56].mxu0 %vm872_vm3, %v2437_v25 }
 0xa2d   : > { %4145 = vrcp.f32 %v2420_v17  ;;  %3854 = vmatpush3.bf16.msra.mxu0 %v2536_v13  ;;  %3855 = vmatprep.mubr.msk.bf16.mxu0 %vm4220_vm1, %v4219_v14 }
 0xa2e   : > { %v4138_v19 = vpop.eup %4137  ;;  %3865 = vmatprep.subr.bf16.mxu0 %v4011_v22 }
 0xa2f   : > { %v2432_v29 = vmul.f32 %v4138_v19, %v4124_v27  ;;  %v4140_v38 = vpop.eup %4139  ;;  %v2583_v6 = vpop.permute.xlu1 %2582 }
 0xa30   : > { %v2489_v36 = vpop.permute.xlu0 %2488  ;;  %v2433_v54 = vmul.f32 %v4140_v38, %v4122_v41 }
 0xa31   : > { %3848 = vmatpush3.bf16.msra.mxu1 %v2489_v36  ;;  %v2438_v40 = vpack.c.bf16 %v2432_v29, %v2431_v28 }
 0xa32   : > { %3859 = vmatprep.subr.bf16.mxu1 %v4219_v14 }
 0xa33   : > { %v4142_v61 = vpop.eup %4141  ;;  %v3956_v35 = vpop.permute.xlu1 %3955 }
 0xa34   : > { %v2434_v34 = vmul.f32 %v4142_v61, %v4128_v51  ;;  %3850 = vmatmul.mubr.msk.bf16.vlgmr.msra.gmra.mrb[64].mxu1 %vm872_vm3, %v2438_v40  ;;  %v4144_v52 = vpop.eup %4143  ;;  %v3958_v19 = vunpack.i.h.bf16 %v3956_v35  ;;  %v3957_v28 = vunpack.i.l.bf16 %v3956_v35 }
 0xa35   : > { %3860 = vmatpush3.bf16.msra.mxu1 %v2583_v6  ;;  %3861 = vmatprep.mubr.msk.bf16.mxu1 %vm4220_vm1, %v4219_v14  ;;  %v2435_v11 = vmul.f32 %v4144_v52, %v4817_v2  ;;  %v4012_v14 = vld [vmem:[%s5144_s4 + $0x8] sm:$0xff]  }
 0xa36   : > { %v2439_v45 = vpack.c.bf16 %v2434_v34, %v2433_v54  ;;  %v2727_v61 = vsel %vm666_vm2, %v4557_v9, %v3957_v28 }
 0xa37   : > { %v4146_v60 = vpop.eup %4145  ;;  %v3966_v0 = vpop.permute.xlu1 %3965 }
 0xa38   : > { %v2436_v10 = vmul.f32 %v4146_v60, %v4130_v63  ;;  %3856 = vmatmul.mubr.msk.bf16.vlgmr.msra.gmra.mrb[60].mxu0 %vm872_vm3, %v2439_v45  ;;  %v3968_v38 = vunpack.i.h.bf16 %v3966_v0  ;;  %v3967_v40 = vunpack.i.l.bf16 %v3966_v0 }
 0xa39   : > { %3866 = vmatpush3.bf16.msra.mxu0 %v4011_v22 }
 0xa3a   : > { %v2440_v7 = vpack.c.bf16 %v2436_v10, %v2435_v11  ;;  %3867 = vmatprep.subr.bf16.mxu0 %v4012_v14  ;;  %v2735_v60 = vsel %vm872_vm3, %v2727_v61, %v3967_v40  ;;  %v4191_v61 = vld [vmem:[%s4342_s24 + $0x20] sm:$0xff] }
 0xa3b   : > { %v3976_v29 = vpop.permute.xlu1 %3975 }
 0xa3c   : > { %3862 = vmatmul.mubr.msk.bf16.vlgmr.msra.gmra.mrb[68].mxu1 %vm872_vm3, %v2440_v7 }
 0xa3d   : > { %3868 = vmatpush3.bf16.msra.mxu0 %v4012_v14 }
 0xaff   : > { %v2481_v23 = vpop.f32.mrb[56].mxu0 }
 0xb00   : > { %v3845_v26 = vpop.f32.mrb[57].mxu0 }
 0xb01   : > { %v2484_v37 = vpop.f32.mrb[58].mxu0 }
 0xb02   : > { %v3979_v15 = vpack.i.bf16 %v2484_v37, %v2481_v23  ;;  %v3846_v57 = vpop.f32.mrb[59].mxu0  ;;  %v3978_v23 = vunpack.i.h.bf16 %v3976_v29 }
 0xb04   : > { %3980 = vrot.lane.b32.xlu0 %v3979_v15, %s4234_s26 }
 0xb07   : > { %v2528_v50 = vpop.f32.mrb[64].mxu1 }
 0xb08   : > { %v3851_v32 = vpop.f32.mrb[65].mxu1  ;;  %3985 = vrot.lane.b32.xlu0 %v3984_v47, %s4233_s19  ;;  %v3951_v47 = vpop.permute.xlu0 %3950 }
 0xb09   : > { %v2531_v41 = vpop.f32.mrb[66].mxu1  ;;  %v3953_v58 = vunpack.i.h.bf16 %v3951_v47  ;;  %v3952_v59 = vunpack.i.l.bf16 %v3951_v47 }
 0xb0a   : > { %v3989_v27 = vpack.i.bf16 %v2531_v41, %v2528_v50  ;;  %v3852_v46 = vpop.f32.mrb[67].mxu1 }
 0xb0b   : > { %v2575_v39 = vpop.f32.mrb[60].mxu0  ;;  %v2726_v30 = vsel %vm666_vm2, %v4551_v1, %v3953_v58  ;;  %v2725_v48 = vsel %vm666_vm2, %v4549_v62, %v3952_v59  ;;  %v2728_v62 = vsel %vm666_vm2, %v4559_v12, %v3958_v19  ;;  %v3977_v12 = vunpack.i.l.bf16 %v3976_v29  ;;  %v4190_v19 = vld [vmem:[%s4342_s24 + $0x18] sm:$0xff] }
 0xb0c   : > { %v3857_v2 = vpop.f32.mrb[61].mxu0  ;;  %3990 = vrot.lane.b32.xlu1 %v3989_v27, %s4234_s26  ;;  %v3961_v33 = vpop.permute.xlu0 %3960  ;;  %v2736_v11 = vsel %vm872_vm3, %v2728_v62, %v3968_v38 }
 0xb0d   : > { %v2578_v51 = vpop.f32.mrb[62].mxu0  ;;  %v3963_v4 = vunpack.i.h.bf16 %v3961_v33  ;;  %v3962_v8 = vunpack.i.l.bf16 %v3961_v33 }
 0xb0e   : > { %v3999_v42 = vpack.i.bf16 %v2578_v51, %v2575_v39  ;;  %v3858_v53 = vpop.f32.mrb[63].mxu0 }
 0xb0f   : > { %v2622_v63 = vpop.f32.mrb[68].mxu1  ;;  %v2733_v25 = vsel %vm872_vm3, %v2725_v48, %v3962_v8  ;;  %v2734_v13 = vsel %vm872_vm3, %v2726_v30, %v3963_v4  ;;  %v4187_v4 = vld [vmem:[%s4342_s24] sm:$0xff]  ;;  %v4188_v48 = vld [vmem:[%s4342_s24 + $0x10] sm:$0xff] }
 0xb10   : > { %4000 = vrot.lane.b32.xlu0 %v3999_v42, %s4234_s26  ;;  %3995 = vrot.lane.b32.xlu1 %v3994_v49, %s4233_s19  ;;  %v3863_v55 = vpop.f32.mrb[69].mxu1  ;;  %v3971_v56 = vpop.permute.xlu0 %3970 }
 0xb11   : > { %v2625_v31 = vpop.f32.mrb[70].mxu1  ;;  %v3973_v34 = vunpack.i.h.bf16 %v3971_v56  ;;  %v3972_v6 = vunpack.i.l.bf16 %v3971_v56 }
 0xb12   : > { %v4004_v43 = vpack.i.bf16 %v2625_v31, %v2622_v63  ;;  %v3864_v44 = vpop.f32.mrb[71].mxu1 }
 0xb13   : > { %v2730_v15 = vsel %vm666_vm2, %v4555_v5, %v3973_v34  ;;  %v2729_v57 = vsel %vm666_vm2, %v4553_v3, %v3972_v6  ;;  %v2732_v5 = vsel %vm666_vm2, %v4566_v24, %v3978_v23  ;;  %v2731_v3 = vsel %vm666_vm2, %v4563_v20, %v3977_v12  ;;  %v3540_v20 = vld [vmem:[%s5145_s5] ss:$0 sm:$0xff] }
 0xb14   : > { %4005 = vrot.lane.b32.xlu1 %v4004_v43, %s4234_s26 }
 0xb76   : > { %v3981_v21 = vpop.permute.xlu0 %3980 }
 0xb77   : > { %v3983_v49 = vunpack.i.h.bf16 %v3981_v21  ;;  %v3982_v16 = vunpack.i.l.bf16 %v3981_v21 }
 0xb79   : > { %v2742_v17 = vsel %vm2741_vm4, %v2733_v25, %v3982_v16  ;;  %v2743_v18 = vsel %vm2741_vm4, %v2734_v13, %v3983_v49  ;;  %v4189_v16 = vld [vmem:[%s4342_s24 + $0x8] sm:$0xff] }
 0xb7a   : > { %v2750_v36 = vpack.c.bf16 %v2743_v18, %v2742_v17  ;;  %v3986_v1 = vpop.permute.xlu0 %3985 }
 0xb7b   : > { %v3988_v10 = vunpack.i.h.bf16 %v3986_v1  ;;  %v3987_v7 = vunpack.i.l.bf16 %v3986_v1 }
 0xb7c   : > { %3869 = vmatprep.mubr.msk.bf16.mxu0 %vm573_vm0, %v2750_v36 }
 0xb7d   : > { %v2737_v41 = vsel %vm872_vm3, %v2729_v57, %v3987_v7  ;;  %v2738_v27 = vsel %vm872_vm3, %v2730_v15, %v3988_v10 }
 0xb7e   : > { %v3991_v54 = vpop.permute.xlu1 %3990 }
 0xb7f   : > { %v3993_v52 = vunpack.i.h.bf16 %v3991_v54  ;;  %v3992_v45 = vunpack.i.l.bf16 %v3991_v54 }
 0xb81   : > { %v2745_v22 = vsel %vm2741_vm4, %v2736_v11, %v3993_v52  ;;  %v2744_v14 = vsel %vm2741_vm4, %v2735_v60, %v3992_v45  ;;  %v4192_v52 = vld [vmem:[%s4342_s24 + $0x30] sm:$0xff]  ;;  %v4193_v11 = vld [vmem:[%s4342_s24 + $0x28] sm:$0xff] }
 0xb82   : > { %v2751_v26 = vpack.c.bf16 %v2745_v22, %v2744_v14  ;;  %v3996_v37 = vpop.permute.xlu1 %3995  ;;  %v4001_v9 = vpop.permute.xlu0 %4000  ;;  %v4194_v22 = vld [vmem:[%s4342_s24 + $0x38] sm:$0xff] }
 0xb83   : > { %v4003_v50 = vunpack.i.h.bf16 %v4001_v9  ;;  %v4002_v32 = vunpack.i.l.bf16 %v4001_v9  ;;  %v3998_v46 = vunpack.i.h.bf16 %v3996_v37  ;;  %v3997_v39 = vunpack.i.l.bf16 %v3996_v37 }
 0xb84   : > { %3870 = vmatmul.mubr.msk.bf16.vlgmr.msra.gmra.mrb[64].mxu0 %vm573_vm0, %v2751_v26 }
 0xb85   : > { %v2746_v2 = vsel %vm2741_vm4, %v2737_v41, %v4002_v32  ;;  %v2747_v51 = vsel %vm2741_vm4, %v2738_v27, %v4003_v50  ;;  %v2740_v31 = vsel %vm872_vm3, %v2732_v5, %v3998_v46  ;;  %v2739_v43 = vsel %vm872_vm3, %v2731_v3, %v3997_v39 }
 0xb86   : > { %v2752_v42 = vpack.c.bf16 %v2747_v51, %v2746_v2  ;;  %v4006_v53 = vpop.permute.xlu1 %4005 }
 0xb87   : > { %v4008_v63 = vunpack.i.h.bf16 %v4006_v53  ;;  %v4007_v55 = vunpack.i.l.bf16 %v4006_v53 }
 0xb88   : > { %3873 = vmatprep.mubr.msk.bf16.mxu0 %vm573_vm0, %v2752_v42 }
 0xb89   : > { %v2749_v44 = vsel %vm2741_vm4, %v2740_v31, %v4008_v63  ;;  %v2748_v47 = vsel %vm2741_vm4, %v2739_v43, %v4007_v55 }
 0xb8a   : > { %v2753_v33 = vpack.c.bf16 %v2749_v44, %v2748_v47 }
 0xb8c   : > { %3874 = vmatmul.mubr.msk.bf16.gmra.mrb[68].mxu0 %vm573_vm0, %v2753_v33 }
 0xc57   : > { %v3871_v24 = vpop.f32.mrb[64].mxu0 }
 0xc58   : > { %v2823_v35 = vpop.f32.mrb[65].mxu0  ;;  %v2832_v56 = vadd.f32 %v3871_v24, %v3540_v20 }
 0xc59   : > { %v2824_v58 = vadd.f32 %v3540_v20, %v2823_v35  ;;  %v3872_v59 = vpop.f32.mrb[66].mxu0 }
 0xc5a   : > { %v2826_v0 = vpop.f32.mrb[67].mxu0  ;;  %v2835_v30 = vadd.f32 %v3872_v59, %v3540_v20  ;;  %v2856_v49 = vadd.f32 %v4188_v48, %v2832_v56 }
 0xc5b   : > { %v2854_v8 = vadd.f32 %v4187_v4, %v2824_v58  ;;  %v2827_v21 = vadd.f32 %v3540_v20, %v2826_v0 }
 0xc5c   : > { %v2857_v28 = vadd.f32 %v4190_v19, %v2835_v30  ;;  %v2868_v1 = vsel %vm573_vm0, %v2856_v49, 0.0  ;;  %v4014_v19 = vld [vmem:[%s5148_s8 + $0x8] sm:$0xff]  }
 0xc5d   : > { %v2855_v25 = vadd.f32 %v4189_v16, %v2827_v21  ;;  %v2862_v13 = vsel %vm573_vm0, %v2854_v8, 0.0 }
 0xc5e   : > { %2863 = vadd.xlane.f32.xlu0 %v2862_v13  ;;  %v2871_v6 = vsel %vm573_vm0, %v2857_v28, 0.0 }
 0xc5f   : > { %v3875_v17 = vpop.f32.mrb[68].mxu0  ;;  %v2865_v18 = vsel %vm573_vm0, %v2855_v25, 0.0 }
 0xc60   : > { %v2839_v29 = vpop.f32.mrb[69].mxu0  ;;  %2866 = vadd.xlane.f32.xlu1 %v2865_v18  ;;  %v2848_v36 = vadd.f32 %v3875_v17, %v3540_v20  ;;  %v4013_v18 = vld [vmem:[%s5148_s8] sm:$0xff]  }
 0xc61   : > { %v2840_v38 = vadd.f32 %v3540_v20, %v2839_v29  ;;  %v3876_v40 = vpop.f32.mrb[70].mxu0  ;;  %3877 = vmatprep.subr.bf16.mxu1 %v4013_v18  ;;  %v4016_v29 = vld [vmem:[%s5150_s10 + $0x8] sm:$0xff]  }
 0xc62   : > { %v2842_v62 = vpop.f32.mrb[71].mxu0  ;;  %2869 = vadd.xlane.f32.xlu0 %v2868_v1  ;;  %v2860_v45 = vadd.f32 %v4192_v52, %v2848_v36  ;;  %v2851_v60 = vadd.f32 %v3876_v40, %v3540_v20  ;;  %3878 = vmatpush3.bf16.msra.mxu1 %v4013_v18 }
 0xc63   : > { %v2858_v54 = vadd.f32 %v4191_v61, %v2840_v38  ;;  %v2843_v34 = vadd.f32 %v3540_v20, %v2842_v62  ;;  %3879 = vmatprep.subr.bf16.mxu1 %v4014_v19 }
 0xc64   : > { %v2861_v14 = vadd.f32 %v4194_v22, %v2851_v60  ;;  %v2880_v23 = vsel %vm573_vm0, %v2860_v45, 0.0 }
 0xc65   : > { %v2859_v10 = vadd.f32 %v4193_v11, %v2843_v34  ;;  %v2874_v7 = vsel %vm573_vm0, %v2858_v54, 0.0 }
 0xc66   : > { %2875 = vadd.xlane.f32.xlu1 %v2874_v7  ;;  %2872 = vadd.xlane.f32.xlu0 %v2871_v6  ;;  %v2883_v26 = vsel %vm573_vm0, %v2861_v14, 0.0 }
 0xc67   : > { %v2877_v12 = vsel %vm573_vm0, %v2859_v10, 0.0  ;;  %3880 = vmatpush3.bf16.msra.mxu1 %v4014_v19 }
 0xc6a   : > { %2881 = vadd.xlane.f32.xlu1 %v2880_v23  ;;  %2878 = vadd.xlane.f32.xlu0 %v2877_v12 }
 0xc6e   : > { %2884 = vadd.xlane.f32.xlu0 %v2883_v26 }
 0xceb   : > { %v2864_v37 = vpop.xlane.xlu0 %2863 }
 0xcec   : > { %v2887_v9 = vmul.f32 0.03125, %v2864_v37  ;;  %v3547_v37 = vld [vmem:[%s5146_s6] ss:$0 sm:$0xff] }
 0xced   : > { %v2867_v15 = vpop.xlane.xlu1 %2866 }
 0xcee   : > { %v4928_v57 = vsub.f32 %v2854_v8, %v2887_v9  ;;  %v2888_v50 = vmul.f32 0.03125, %v2867_v15 }
 0xcef   : > { %v2870_v32 = vpop.xlane.xlu0 %2869 }
 0xcf0   : > { %v4930_v41 = vsub.f32 %v2855_v25, %v2888_v50  ;;  %v2889_v27 = vmul.f32 0.03125, %v2870_v32  ;;  %v2903_v46 = vmul.f32 %v4928_v57, %v4928_v57 }
 0xcf2   : > { %v4934_v39 = vsub.f32 %v2856_v49, %v2889_v27  ;;  %v2911_v2 = vsel %vm573_vm0, %v2903_v46, 0.0  ;;  %v2904_v51 = vmul.f32 %v4930_v41, %v4930_v41 }
 0xcf3   : > { %v2876_v42 = vpop.xlane.xlu1 %2875  ;;  %2912 = vadd.xlane.f32.xlu1 %v2911_v2  ;;  %v2873_v53 = vpop.xlane.xlu0 %2872 }
 0xcf4   : > { %v2891_v5 = vmul.f32 0.03125, %v2876_v42  ;;  %v2890_v3 = vmul.f32 0.03125, %v2873_v53  ;;  %v2914_v63 = vsel %vm573_vm0, %v2904_v51, 0.0  ;;  %v2905_v55 = vmul.f32 %v4934_v39, %v4934_v39 }
 0xcf5   : > { %2915 = vadd.xlane.f32.xlu0 %v2914_v63 }
 0xcf6   : > { %v4942_v31 = vsub.f32 %v2858_v54, %v2891_v5  ;;  %v4944_v43 = vsub.f32 %v2857_v28, %v2890_v3  ;;  %v2917_v44 = vsel %vm573_vm0, %v2905_v55, 0.0  ;;  %v4015_v28 = vld [vmem:[%s5150_s10] sm:$0xff]  }
 0xcf7   : > { %v2882_v47 = vpop.xlane.xlu1 %2881  ;;  %2918 = vadd.xlane.f32.xlu1 %v2917_v44  ;;  %v2879_v33 = vpop.xlane.xlu0 %2878  ;;  %3889 = vmatprep.subr.bf16.mxu0 %v4015_v28  ;;  %v3548_v5 = vld [vmem:[%s5147_s7] ss:$0 sm:$0xff] }
 0xcf8   : > { %v2893_v20 = vmul.f32 0.03125, %v2882_v47  ;;  %v2892_v24 = vmul.f32 0.03125, %v2879_v33  ;;  %v2907_v35 = vmul.f32 %v4942_v31, %v4942_v31  ;;  %v2906_v56 = vmul.f32 %v4944_v43, %v4944_v43  ;;  %3890 = vmatpush3.bf16.msra.mxu0 %v4015_v28  ;;  %v4017_v28 = vld [vmem:[%s5150_s10 + $0x10] sm:$0xff]  }
 0xcf9   : > { %3891 = vmatprep.subr.bf16.mxu0 %v4016_v29 }
 0xcfa   : > { %v4951_v58 = vsub.f32 %v2860_v45, %v2893_v20  ;;  %v4953_v59 = vsub.f32 %v2859_v10, %v2892_v24  ;;  %v2923_v0 = vsel %vm573_vm0, %v2907_v35, 0.0  ;;  %v2920_v4 = vsel %vm573_vm0, %v2906_v56, 0.0 }
 0xcfb   : > { %2924 = vadd.xlane.f32.xlu1 %v2923_v0  ;;  %2921 = vadd.xlane.f32.xlu0 %v2920_v4  ;;  %v2885_v8 = vpop.xlane.xlu0 %2884 }
 0xcfc   : > { %v2894_v21 = vmul.f32 0.03125, %v2885_v8  ;;  %v2909_v30 = vmul.f32 %v4951_v58, %v4951_v58  ;;  %v2908_v48 = vmul.f32 %v4953_v59, %v4953_v59  ;;  %3892 = vmatpush3.bf16.msra.mxu0 %v4016_v29  ;;  %v4018_v29 = vld [vmem:[%s5150_s10 + $0x18] sm:$0xff]  }
 0xcfd   : > { %3893 = vmatprep.subr.bf16.mxu0 %v4017_v28 }
 0xcfe   : > { %v4961_v49 = vsub.f32 %v2861_v14, %v2894_v21  ;;  %v2929_v16 = vsel %vm573_vm0, %v2909_v30, 0.0  ;;  %v2926_v25 = vsel %vm573_vm0, %v2908_v48, 0.0 }
 0xcff   : > { %2930 = vadd.xlane.f32.xlu1 %v2929_v16  ;;  %2927 = vadd.xlane.f32.xlu0 %v2926_v25 }
 0xd00   : > { %v2910_v13 = vmul.f32 %v4961_v49, %v4961_v49  ;;  %3894 = vmatpush3.bf16.msra.mxu0 %v4017_v28 }
 0xd01   : > { %3895 = vmatprep.subr.bf16.mxu0 %v4018_v29 }
 0xd02   : > { %v2932_v17 = vsel %vm573_vm0, %v2910_v13, 0.0 }
 0xd03   : > { %2933 = vadd.xlane.f32.xlu0 %v2932_v17 }
 0xd04   : > { %3896 = vmatpush3.bf16.msra.mxu0 %v4018_v29 }
 0xd80   : > { %v2913_v36 = vpop.xlane.xlu1 %2912 }
 0xd81   : > { %v2935_v38 = vmul.f32 0.03125, %v2913_v36  ;;  %v3549_v36 = vld [vmem:[%s5149_s9] ss:$0 sm:$0xff] }
 0xd82   : > { %v2916_v40 = vpop.xlane.xlu0 %2915 }
 0xd83   : > { %v2943_v1 = vadd.f32 1e-05, %v2935_v38  ;;  %v2936_v62 = vmul.f32 0.03125, %v2916_v40 }
 0xd84   : > { %v2919_v61 = vpop.xlane.xlu1 %2918 }
 0xd85   : > { %4147 = vrsqrt.f32 %v2943_v1  ;;  %v2944_v54 = vadd.f32 1e-05, %v2936_v62  ;;  %v2937_v34 = vmul.f32 0.03125, %v2919_v61 }
 0xd87   : > { %4149 = vrsqrt.f32 %v2944_v54  ;;  %v2945_v6 = vadd.f32 1e-05, %v2937_v34 }
 0xd88   : > { %v2925_v52 = vpop.xlane.xlu1 %2924  ;;  %v2922_v45 = vpop.xlane.xlu0 %2921 }
 0xd89   : > { %4151 = vrsqrt.f32 %v2945_v6  ;;  %v2939_v60 = vmul.f32 0.03125, %v2925_v52  ;;  %v2938_v11 = vmul.f32 0.03125, %v2922_v45 }
 0xd8b   : > { %v2947_v10 = vadd.f32 1e-05, %v2939_v60  ;;  %v2946_v7 = vadd.f32 1e-05, %v2938_v11 }
 0xd8c   : > { %v2931_v22 = vpop.xlane.xlu1 %2930  ;;  %v2928_v14 = vpop.xlane.xlu0 %2927 }
 0xd8d   : > { %4153 = vrsqrt.f32 %v2947_v10  ;;  %v2941_v23 = vmul.f32 0.03125, %v2931_v22  ;;  %v2940_v12 = vmul.f32 0.03125, %v2928_v14 }
 0xd8e   : > { %4155 = vrsqrt.f32 %v2946_v7 }
 0xd8f   : > { %v4148_v26 = vpop.eup %4147  ;;  %v2949_v9 = vadd.f32 1e-05, %v2941_v23  ;;  %v2948_v15 = vadd.f32 1e-05, %v2940_v12 }
 0xd90   : > { %v2959_v50 = vmul.f32 %v4148_v26, %v4928_v57  ;;  %v2934_v32 = vpop.xlane.xlu0 %2933 }
 0xd91   : > { %v4150_v27 = vpop.eup %4149  ;;  %4157 = vrsqrt.f32 %v2949_v9  ;;  %v2942_v46 = vmul.f32 0.03125, %v2934_v32 }
 0xd92   : > { %v2960_v2 = vmul.f32 %v4150_v27, %v4930_v41  ;;  %4159 = vrsqrt.f32 %v2948_v15  ;;  %v2974_v51 = vmul.f32 %v3547_v37, %v2959_v50 }
 0xd93   : > { %v4152_v42 = vpop.eup %4151  ;;  %v2950_v53 = vadd.f32 1e-05, %v2942_v46 }
 0xd94   : > { %v2975_v3 = vmul.f32 %v3547_v37, %v2960_v2  ;;  %v2961_v63 = vmul.f32 %v4152_v42, %v4934_v39  ;;  %v4989_v55 = vadd.f32 %v3548_v5, %v2974_v51  ;;  %v3556_v42 = vld [vmem:[%s5151_s11] ss:$0 sm:$0xff] }
 0xd95   : > { %4161 = vrsqrt.f32 %v2950_v53 }
 0xd96   : > { %v4991_v57 = vadd.f32 %v3548_v5, %v2975_v3  ;;  %v2976_v33 = vmul.f32 %v3547_v37, %v2961_v63 }
 0xd97   : > { %v4154_v44 = vpop.eup %4153 }
 0xd98   : > { %v4156_v47 = vpop.eup %4155  ;;  %v2997_v41 = vpack.c.bf16 %v4991_v57, %v4989_v55  ;;  %v2963_v20 = vmul.f32 %v4154_v44, %v4942_v31  ;;  %v5000_v8 = vadd.f32 %v3548_v5, %v2976_v33 }
 0xd99   : > { %v2962_v24 = vmul.f32 %v4156_v47, %v4944_v43 }
 0xd9a   : > { %3881 = vmatprep.mubr.msk.bf16.mxu1 %vm573_vm0, %v2997_v41  ;;  %v2978_v30 = vmul.f32 %v3547_v37, %v2963_v20 }
 0xd9b   : > { %v4158_v35 = vpop.eup %4157  ;;  %v2977_v56 = vmul.f32 %v3547_v37, %v2962_v24 }
 0xd9c   : > { %v4160_v39 = vpop.eup %4159  ;;  %v2965_v0 = vmul.f32 %v4158_v35, %v4951_v58  ;;  %v5008_v13 = vadd.f32 %v3548_v5, %v2978_v30 }
 0xd9d   : > { %v2964_v4 = vmul.f32 %v4160_v39, %v4953_v59  ;;  %v5002_v21 = vadd.f32 %v3548_v5, %v2977_v56 }
 0xd9e   : > { %v2980_v25 = vmul.f32 %v3547_v37, %v2965_v0 }
 0xd9f   : > { %v4162_v48 = vpop.eup %4161  ;;  %v2998_v31 = vpack.c.bf16 %v5002_v21, %v5000_v8  ;;  %v2979_v16 = vmul.f32 %v3547_v37, %v2964_v4 }
 0xda0   : > { %v2966_v43 = vmul.f32 %v4162_v48, %v4961_v49  ;;  %v5014_v18 = vadd.f32 %v3548_v5, %v2980_v25 }
 0xda1   : > { %3882 = vmatmul.mubr.msk.bf16.vlgmr.msra.gmra.mrb[72].mxu1 %vm573_vm0, %v2998_v31  ;;  %v5010_v58 = vadd.f32 %v3548_v5, %v2979_v16 }
 0xda2   : > { %v2981_v59 = vmul.f32 %v3547_v37, %v2966_v43 }
 0xda3   : > { %v2999_v17 = vpack.c.bf16 %v5010_v58, %v5008_v13 }
 0xda4   : > { %v5016_v19 = vadd.f32 %v3548_v5, %v2981_v59 }
 0xda5   : > { %3885 = vmatprep.mubr.msk.bf16.mxu1 %vm573_vm0, %v2999_v17 }
 0xda6   : > { %v3000_v49 = vpack.c.bf16 %v5016_v19, %v5014_v18 }
 0xda9   : > { %3886 = vmatmul.mubr.msk.bf16.gmra.mrb[76].mxu1 %vm573_vm0, %v3000_v49 }
 0xe74   : > { %v3883_v38 = vpop.f32.mrb[72].mxu1 }
 0xe75   : > { %v3079_v40 = vadd.f32 %v3883_v38, %v3549_v36  ;;  %v3070_v1 = vpop.f32.mrb[73].mxu1 }
 0xe76   : > { %v3071_v62 = vadd.f32 %v3549_v36, %v3070_v1  ;;  %v3884_v61 = vpop.f32.mrb[74].mxu1 }
 0xe77   : > { %v3082_v54 = vadd.f32 %v3884_v61, %v3549_v36  ;;  %v3073_v34 = vpop.f32.mrb[75].mxu1  ;;  %v3103_v52 = vmax.f32 %v3079_v40, 0.0 }
 0xe78   : > { %v3074_v6 = vadd.f32 %v3549_v36, %v3073_v34  ;;  %v3101_v60 = vmax.f32 %v3071_v62, 0.0 }
 0xe79   : > { %v3104_v45 = vmax.f32 %v3082_v54, 0.0 }
 0xe7a   : > { %v3102_v11 = vmax.f32 %v3074_v6, 0.0 }
 0xe7b   : > { %v3110_v10 = vpack.c.bf16 %v3104_v45, %v3103_v52 }
 0xe7c   : > { %v3109_v7 = vpack.c.bf16 %v3102_v11, %v3101_v60  ;;  %v3887_v22 = vpop.f32.mrb[76].mxu1 }
 0xe7d   : > { %v3095_v14 = vadd.f32 %v3887_v22, %v3549_v36  ;;  %v3086_v23 = vpop.f32.mrb[77].mxu1 }
 0xe7e   : > { %v3087_v12 = vadd.f32 %v3549_v36, %v3086_v23  ;;  %v3888_v26 = vpop.f32.mrb[78].mxu1  ;;  %3897 = vmatprep.mubr.msk.bf16.mxu0 %vm3152_vm5, %v3109_v7 }
 0xe7f   : > { %v3098_v37 = vadd.f32 %v3888_v26, %v3549_v36  ;;  %v3089_v9 = vpop.f32.mrb[79].mxu1  ;;  %3898 = vmatmul.mubr.msk.bf16.vlgmr.msra.gmra.mrb[72].mxu0 %vm3152_vm5, %v3110_v10  ;;  %v3107_v50 = vmax.f32 %v3095_v14, 0.0 }
 0xe80   : > { %v3090_v15 = vadd.f32 %v3549_v36, %v3089_v9  ;;  %v3105_v27 = vmax.f32 %v3087_v12, 0.0 }
 0xe81   : > { %v3108_v32 = vmax.f32 %v3098_v37, 0.0 }
 0xe82   : > { %v3106_v46 = vmax.f32 %v3090_v15, 0.0 }
 0xe83   : > { %v3112_v2 = vpack.c.bf16 %v3108_v32, %v3107_v50 }
 0xe84   : > { %v3111_v51 = vpack.c.bf16 %v3106_v46, %v3105_v27 }
 0xe86   : > { %3901 = vmatprep.mubr.msk.bf16.mxu0 %vm3152_vm5, %v3111_v51 }
 0xe87   : > { %3902 = vmatmul.mubr.msk.bf16.gmra.mrb[76].mxu0 %vm3152_vm5, %v3112_v2 }
 0xf52   : > { %v3899_v53 = vpop.f32.mrb[72].mxu0 }
 0xf53   : > { %v3208_v5 = vadd.f32 %v3899_v53, %v3556_v42  ;;  %v3199_v3 = vpop.f32.mrb[73].mxu0 }
 0xf54   : > { %v3200_v63 = vadd.f32 %v3556_v42, %v3199_v3  ;;  %v3900_v44 = vpop.f32.mrb[74].mxu0 }
 0xf55   : > { %v3232_v47 = vadd.f32 %v3208_v5, %v5000_v8  ;;  %v3211_v41 = vadd.f32 %v3900_v44, %v3556_v42  ;;  %v3202_v33 = vpop.f32.mrb[75].mxu0 }
 0xf56   : > { %v3203_v20 = vadd.f32 %v3556_v42, %v3202_v33  ;;  %v3230_v24 = vadd.f32 %v3200_v63, %v4989_v55 }
 0xf57   : > { %v3233_v35 = vadd.f32 %v3211_v41, %v5002_v21  ;;  %v3244_v56 = vsel %vm573_vm0, %v3232_v47, 0.0 }
 0xf58   : > { %3245 = vadd.xlane.f32.xlu1 %v3244_v56  ;;  %v3231_v39 = vadd.f32 %v3203_v20, %v4991_v57  ;;  %v3238_v48 = vsel %vm573_vm0, %v3230_v24, 0.0 }
 0xf59   : > { %v3247_v0 = vsel %vm573_vm0, %v3233_v35, 0.0 }
 0xf5a   : > { %3248 = vadd.xlane.f32.xlu0 %v3247_v0  ;;  %v3903_v4 = vpop.f32.mrb[76].mxu0  ;;  %v3241_v55 = vsel %vm573_vm0, %v3231_v39, 0.0 }
 0xf5b   : > { %v3215_v30 = vpop.f32.mrb[77].mxu0  ;;  %v3224_v8 = vadd.f32 %v3903_v4, %v3556_v42 }
 0xf5c   : > { %v3216_v31 = vadd.f32 %v3556_v42, %v3215_v30  ;;  %3239 = vadd.xlane.f32.xlu1 %v3238_v48  ;;  %v3904_v16 = vpop.f32.mrb[78].mxu0 }
 0xf5d   : > { %v3218_v43 = vpop.f32.mrb[79].mxu0  ;;  %v3227_v25 = vadd.f32 %v3904_v16, %v3556_v42  ;;  %v3236_v57 = vadd.f32 %v3224_v8, %v5014_v18 }
 0xf5e   : > { %v3234_v21 = vadd.f32 %v3216_v31, %v5008_v13  ;;  %v3219_v59 = vadd.f32 %v3556_v42, %v3218_v43  ;;  %3242 = vadd.xlane.f32.xlu0 %v3241_v55 }
 0xf5f   : > { %v3237_v28 = vadd.f32 %v3227_v25, %v5016_v19  ;;  %v3256_v36 = vsel %vm573_vm0, %v3236_v57, 0.0 }
 0xf60   : > { %v3235_v17 = vadd.f32 %v3219_v59, %v5010_v58  ;;  %v3250_v49 = vsel %vm573_vm0, %v3234_v21, 0.0 }
 0xf61   : > { %3251 = vadd.xlane.f32.xlu1 %v3250_v49  ;;  %v3259_v13 = vsel %vm573_vm0, %v3237_v28, 0.0 }
 0xf62   : > { %v3253_v29 = vsel %vm573_vm0, %v3235_v17, 0.0 }
 0xf63   : > { %3254 = vadd.xlane.f32.xlu0 %v3253_v29  ;;  %v3565_v29 = vld [vmem:[%s5152_s12] ss:$0 sm:$0xff] }
 0xf65   : > { %3257 = vadd.xlane.f32.xlu1 %v3256_v36 }
 0xf67   : > { %3260 = vadd.xlane.f32.xlu0 %v3259_v13 }
 0xfe5   : > { %v3246_v38 = vpop.xlane.xlu1 %3245 }
 0xfe6   : > { %v3264_v40 = vmul.f32 0.03125, %v3246_v38 }
 0xfe7   : > { %v3249_v1 = vpop.xlane.xlu0 %3248 }
 0xfe8   : > { %v5054_v18 = vsub.f32 %v3232_v47, %v3264_v40  ;;  %v3265_v58 = vmul.f32 0.03125, %v3249_v1 }
 0xfe9   : > { %v3240_v62 = vpop.xlane.xlu1 %3239 }
 0xfea   : > { %v5056_v61 = vsub.f32 %v3233_v35, %v3265_v58  ;;  %v3262_v54 = vmul.f32 0.03125, %v3240_v62  ;;  %v3280_v19 = vmul.f32 %v5054_v18, %v5054_v18  ;;  %v3566_v58 = vld [vmem:[%s5153_s13] ss:$0 sm:$0xff] }
 0xfeb   : > { %v3243_v34 = vpop.xlane.xlu0 %3242 }
 0xfec   : > { %v5060_v6 = vsub.f32 %v3230_v24, %v3262_v54  ;;  %v3263_v52 = vmul.f32 0.03125, %v3243_v34  ;;  %v3292_v45 = vsel %vm573_vm0, %v3280_v19, 0.0  ;;  %v3281_v60 = vmul.f32 %v5056_v61, %v5056_v61 }
 0xfed   : > { %3293 = vadd.xlane.f32.xlu1 %v3292_v45 }
 0xfee   : > { %v5065_v11 = vsub.f32 %v3231_v39, %v3263_v52  ;;  %v3252_v10 = vpop.xlane.xlu1 %3251  ;;  %v3295_v7 = vsel %vm573_vm0, %v3281_v60, 0.0  ;;  %v3278_v22 = vmul.f32 %v5060_v6, %v5060_v6 }
 0xfef   : > { %v3266_v14 = vmul.f32 0.03125, %v3252_v10  ;;  %3296 = vadd.xlane.f32.xlu0 %v3295_v7 }
 0xff0   : > { %v3255_v23 = vpop.xlane.xlu0 %3254  ;;  %v3286_v12 = vsel %vm573_vm0, %v3278_v22, 0.0  ;;  %v3279_v26 = vmul.f32 %v5065_v11, %v5065_v11 }
 0xff1   : > { %v5073_v37 = vsub.f32 %v3234_v21, %v3266_v14  ;;  %v3267_v9 = vmul.f32 0.03125, %v3255_v23  ;;  %3287 = vadd.xlane.f32.xlu1 %v3286_v12 }
 0xff2   : > { %v3258_v15 = vpop.xlane.xlu1 %3257  ;;  %v3289_v50 = vsel %vm573_vm0, %v3279_v26, 0.0 }
 0xff3   : > { %v5076_v32 = vsub.f32 %v3235_v17, %v3267_v9  ;;  %v3268_v27 = vmul.f32 0.03125, %v3258_v15  ;;  %3290 = vadd.xlane.f32.xlu0 %v3289_v50  ;;  %v3282_v46 = vmul.f32 %v5073_v37, %v5073_v37 }
 0xff4   : > { %v3261_v2 = vpop.xlane.xlu0 %3260 }
 0xff5   : > { %v5080_v51 = vsub.f32 %v3236_v57, %v3268_v27  ;;  %v3269_v42 = vmul.f32 0.03125, %v3261_v2  ;;  %v3298_v53 = vsel %vm573_vm0, %v3282_v46, 0.0  ;;  %v3283_v5 = vmul.f32 %v5076_v32, %v5076_v32 }
 0xff6   : > { %3299 = vadd.xlane.f32.xlu1 %v3298_v53 }
 0xff7   : > { %v5085_v3 = vsub.f32 %v3237_v28, %v3269_v42  ;;  %v3301_v63 = vsel %vm573_vm0, %v3283_v5, 0.0  ;;  %v3284_v44 = vmul.f32 %v5080_v51, %v5080_v51 }
 0xff8   : > { %3302 = vadd.xlane.f32.xlu0 %v3301_v63 }
 0xff9   : > { %v3304_v47 = vsel %vm573_vm0, %v3284_v44, 0.0  ;;  %v3285_v41 = vmul.f32 %v5085_v3, %v5085_v3 }
 0xffa   : > { %3305 = vadd.xlane.f32.xlu1 %v3304_v47 }
 0xffb   : > { %v3307_v33 = vsel %vm573_vm0, %v3285_v41, 0.0 }
 0xffc   : > { %3308 = vadd.xlane.f32.xlu0 %v3307_v33 }
0x107a   : > { %v3294_v20 = vpop.xlane.xlu1 %3293 }
0x107b   : > { %v3312_v24 = vmul.f32 0.03125, %v3294_v20 }
0x107c   : > { %v3297_v35 = vpop.xlane.xlu0 %3296 }
0x107d   : > { %v3320_v56 = vadd.f32 1e-05, %v3312_v24  ;;  %v3313_v39 = vmul.f32 0.03125, %v3297_v35 }
0x107e   : > { %v3288_v0 = vpop.xlane.xlu1 %3287 }
0x107f   : > { %4163 = vrsqrt.f32 %v3320_v56  ;;  %v3321_v4 = vadd.f32 1e-05, %v3313_v39  ;;  %v3310_v30 = vmul.f32 0.03125, %v3288_v0 }
0x1080   : > { %v3291_v48 = vpop.xlane.xlu0 %3290 }
0x1081   : > { %4165 = vrsqrt.f32 %v3321_v4  ;;  %v3318_v8 = vadd.f32 1e-05, %v3310_v30  ;;  %v3311_v31 = vmul.f32 0.03125, %v3291_v48 }
0x1083   : > { %4167 = vrsqrt.f32 %v3318_v8  ;;  %v3319_v16 = vadd.f32 1e-05, %v3311_v31  ;;  %v3300_v43 = vpop.xlane.xlu1 %3299 }
0x1084   : > { %v3314_v55 = vmul.f32 0.03125, %v3300_v43 }
0x1085   : > { %4169 = vrsqrt.f32 %v3319_v16  ;;  %v3303_v21 = vpop.xlane.xlu0 %3302 }
0x1086   : > { %v3322_v25 = vadd.f32 1e-05, %v3314_v55  ;;  %v3315_v59 = vmul.f32 0.03125, %v3303_v21 }
0x1087   : > { %v3306_v57 = vpop.xlane.xlu1 %3305 }
0x1088   : > { %4171 = vrsqrt.f32 %v3322_v25  ;;  %v3323_v17 = vadd.f32 1e-05, %v3315_v59  ;;  %v3316_v49 = vmul.f32 0.03125, %v3306_v57 }
0x1089   : > { %v4164_v28 = vpop.eup %4163  ;;  %v3309_v36 = vpop.xlane.xlu0 %3308 }
0x108a   : > { %v3336_v13 = vmul.f32 %v4164_v28, %v5054_v18  ;;  %4173 = vrsqrt.f32 %v3323_v17  ;;  %v3324_v38 = vadd.f32 1e-05, %v3316_v49  ;;  %v3317_v40 = vmul.f32 0.03125, %v3309_v36 }
0x108b   : > { %v4166_v1 = vpop.eup %4165 }
0x108c   : > { %v3351_v62 = vmul.f32 %v3565_v29, %v3336_v13  ;;  %v3337_v54 = vmul.f32 %v4166_v1, %v5056_v61  ;;  %4175 = vrsqrt.f32 %v3324_v38  ;;  %v3325_v19 = vadd.f32 1e-05, %v3317_v40 }
0x108d   : > { %v4168_v34 = vpop.eup %4167 }
0x108e   : > { %v3366_v18 = vadd.f32 %v3566_v58, %v3351_v62  ;;  %v3352_v52 = vmul.f32 %v3565_v29, %v3337_v54  ;;  %v3334_v45 = vmul.f32 %v4168_v34, %v5060_v6  ;;  %4177 = vrsqrt.f32 %v3325_v19 }
0x108f   : > { %v4170_v60 = vpop.eup %4169 }
0x1090   : > { %3374 = vst.msk [vmem:[%s5107_s20 + $0x10] sm:$0xff] %vm573_vm0, %v3366_v18  ;;  %v3367_v61 = vadd.f32 %v3566_v58, %v3352_v52  ;;  %v3349_v10 = vmul.f32 %v3565_v29, %v3334_v45  ;;  %v3335_v7 = vmul.f32 %v4170_v60, %v5065_v11 }
0x1092   : > { %v4172_v22 = vpop.eup %4171  ;;  %3375 = vst.msk [vmem:[%s5107_s20 + $0x18] sm:$0xff] %vm573_vm0, %v3367_v61  ;;  %v3364_v14 = vadd.f32 %v3566_v58, %v3349_v10  ;;  %v3350_v23 = vmul.f32 %v3565_v29, %v3335_v7 }
0x1093   : > { %v3338_v12 = vmul.f32 %v4172_v22, %v5073_v37 }
0x1094   : > { %v4174_v26 = vpop.eup %4173  ;;  %3372 = vst.msk [vmem:[%s5107_s20] sm:$0xff] %vm573_vm0, %v3364_v14  ;;  %v3365_v6 = vadd.f32 %v3566_v58, %v3350_v23 }
0x1095   : > { %v3353_v9 = vmul.f32 %v3565_v29, %v3338_v12  ;;  %v3339_v15 = vmul.f32 %v4174_v26, %v5076_v32 }
0x1096   : > { %v4176_v50 = vpop.eup %4175  ;;  %3373 = vst.msk [vmem:[%s5107_s20 + $0x8] sm:$0xff] %vm573_vm0, %v3365_v6 }
0x1097   : > { %v3368_v11 = vadd.f32 %v3566_v58, %v3353_v9  ;;  %v3354_v27 = vmul.f32 %v3565_v29, %v3339_v15  ;;  %v3340_v46 = vmul.f32 %v4176_v50, %v5080_v51 }
0x1098   : > { %v4178_v2 = vpop.eup %4177 }
0x1099   : > { %3376 = vst.msk [vmem:[%s5107_s20 + $0x20] sm:$0xff] %vm573_vm0, %v3368_v11  ;;  %v3369_v37 = vadd.f32 %v3566_v58, %v3354_v27  ;;  %v3355_v42 = vmul.f32 %v3565_v29, %v3340_v46  ;;  %v3341_v53 = vmul.f32 %v4178_v2, %v5085_v3 }
0x109b   : > { %3377 = vst.msk [vmem:[%s5107_s20 + $0x28] sm:$0xff] %vm573_vm0, %v3369_v37  ;;  %v3370_v5 = vadd.f32 %v3566_v58, %v3355_v42  ;;  %v3356_v63 = vmul.f32 %v3565_v29, %v3341_v53 }
0x109d   : > { %3378 = vst.msk [vmem:[%s5107_s20 + $0x30] sm:$0xff] %vm573_vm0, %v3370_v5  ;;  %v3371_v32 = vadd.f32 %v3566_v58, %v3356_v63 }
0x109f   : > { %3379 = vst.msk [vmem:[%s5107_s20 + $0x38] sm:$0xff] %vm573_vm0, %v3371_v32 }
0x10a0 PF: > { %s24_s15 = sadd.s32 1, %s4217_s15   ;;  %s5155_s29 = smov %s4213_s30 }
0x10a1   : > { %p21_p5 = scmp.ge.s32.totalorder %s24_s15, 4   ;;  %s5156_s30 = smov %s5158_s16 }
0x10a3   :  { %23 = sbr.rel (!%p21_p5) target bundleno = 2 (0x2), region = 109 }

</bundles_post_ra>
